<compile_context>
chip_gen: v7x
topology: tpu7x:2x2x1
jax: 0.10.0
libtpu: 0.0.40
codegen_flags: <defaults>
</compile_context>

<pallas_src>
import math
import functools

import jax
import jax.numpy as jnp
from jax import lax
from jax.experimental import pallas as pl
from jax.experimental.pallas import tpu as pltpu


def _anomaly_attention_kernel(q_ref, k_ref, v_ref, sig_ref,
                              vout_ref, series_ref, prior_ref,
                              *, scale, n_heads):
    # Block shapes: q (Tb, L, H, E), k/v (Tb, S, H, E/D), sig (Tb, H, L, 1),
    # outputs: V (Tb, L, H, D), series/prior (Tb, H, L, S).
    L = q_ref.shape[1]
    S = k_ref.shape[1]

    # Constants shared by every head handled in this grid step.
    rows = lax.broadcasted_iota(jnp.int32, (L, S), 0)
    cols = lax.broadcasted_iota(jnp.int32, (L, S), 1)
    causal = (cols > rows)[None, :, :]                                   # (1, L, S)
    neg_d2 = -jnp.square((rows - cols).astype(jnp.float32))[None, :, :]  # (1, L, S)
    inv_sqrt_2pi = float(1.0 / math.sqrt(2.0 * math.pi))

    # Static (unrolled) loop over heads; per-head accesses are strided slices
    # of the resident VMEM block, per-head matmuls are 3-D (batched over Tb).
    for h in range(n_heads):
        q = q_ref[:, :, h, :] * scale      # (Tb, L, E), scale folded into q
        k = k_ref[:, :, h, :]              # (Tb, S, E)
        v = v_ref[:, :, h, :]              # (Tb, S, D)
        s_col = sig_ref[:, h, :, :]        # (Tb, L, 1), already transformed

        scores = jnp.einsum('ble,bse->bls', q, k,
                            preferred_element_type=jnp.float32)          # (Tb, L, S)
        scores = jnp.where(causal, -jnp.inf, scores)

        m = jnp.max(scores, axis=-1, keepdims=True)
        p = jnp.exp(scores - m)
        # Column reciprocal + broadcast multiply instead of a full (L, S) divide.
        # (pl.reciprocal(..., approx=True) is cheaper still but loosens agreement
        #  with the f32 reference to ~1e-3, so the exact path is kept.)
        inv_den = 1.0 / jnp.sum(p, axis=-1, keepdims=True)               # (Tb, L, 1)
        series = p * inv_den
        # TODO(synk): nn.Dropout(attention_dropout=0.0) is an identity; omitted.

        inv_s = 1.0 / s_col                                              # (Tb, L, 1)
        coef = inv_sqrt_2pi * inv_s
        inv_2s2 = 0.5 * inv_s * inv_s
        prior = coef * jnp.exp(neg_d2 * inv_2s2)                         # (Tb, L, S)

        V = jnp.einsum('bls,bsd->bld', series, v,
                       preferred_element_type=jnp.float32)               # (Tb, L, D)

        vout_ref[:, :, h, :] = V            # scatter back into (B, L, H, D) layout
        series_ref[:, h, :, :] = series
        prior_ref[:, h, :, :] = prior


def _pick_batch_block(B, L, S, H, E, D, buffer_budget_bytes=32 * 1024 * 1024):
    """Largest divisor of B whose double-buffered block footprint fits the budget."""
    per_batch = 4 * (L * H * E + S * H * E + S * H * D    # q, k, v
                     + H * L                               # sigma column
                     + L * H * D + 2 * H * L * S)          # V, series, prior
    tb = 1
    for cand in range(1, B + 1):
        if B % cand == 0 and 2 * cand * per_batch <= buffer_budget_bytes:
            tb = cand
    # Keep >= 2 grid steps when possible so the "parallel" axis can be sharded
    # across the two TensorCores on v7x and the pipeline has work to overlap.
    while tb > 1 and B // tb < 2:
        tb -= 1
        while B % tb:
            tb -= 1
    return tb


def anomaly_attention(queries, keys, values, sigma, scale=None):
    """Returns (V, series, prior, sigma_full) like AnomalyAttention(output_attention=True)."""
    B, L, H, E = queries.shape
    _, S, _, D = values.shape
    assert L == S, "win_size attention requires L == S"
    # Pass scale as a plain Python float so the kernel does not capture a traced
    # constant (fixes the "captures constants [f32[]]" tracing error).
    scale = float(scale) if scale is not None else 1.0 / math.sqrt(E)

    q = queries.astype(jnp.float32)   # (B, L, H, E) - original layout, no transpose
    k = keys.astype(jnp.float32)      # (B, S, H, E)
    v = values.astype(jnp.float32)    # (B, S, H, D)

    # Sigma transform once on the tiny (B, L, H) tensor; the kernel consumes the
    # per-row column and the (B, H, L, S) broadcast is produced lazily here
    # instead of being written from the kernel.
    sig = jax.nn.sigmoid(sigma.astype(jnp.float32) * 5.0) + 1e-5
    sig = jnp.power(3.0, sig) - 1.0                               # (B, L, H)
    sig_col = jnp.transpose(sig, (0, 2, 1))[..., None]            # (B, H, L, 1), tiny

    Tb = _pick_batch_block(B, L, S, H, E, D)
    grid = (B // Tb,)

    kernel = functools.partial(_anomaly_attention_kernel, scale=scale, n_heads=H)

    def block(shape):
        return pl.BlockSpec(shape, lambda g: (g, 0, 0, 0))

    V, series, prior = pl.pallas_call(
        kernel,
        out_shape=(
            jax.ShapeDtypeStruct((B, L, H, D), jnp.float32),   # V, original layout
            jax.ShapeDtypeStruct((B, H, L, S), jnp.float32),   # series
            jax.ShapeDtypeStruct((B, H, L, S), jnp.float32),   # prior
        ),
        grid=grid,
        in_specs=[block((Tb, L, H, E)),
                  block((Tb, S, H, E)),
                  block((Tb, S, H, D)),
                  block((Tb, H, L, 1))],
        out_specs=(block((Tb, L, H, D)),
                   block((Tb, H, L, S)),
                   block((Tb, H, L, S))),
        compiler_params=pltpu.CompilerParams(
            dimension_semantics=("parallel",),
            # Sized against v7x's 64 MiB physical VMEM with headroom; the
            # double-buffered block footprint is capped at 32 MiB above.
            vmem_limit_bytes=48 * 1024 * 1024),
    )(q, k, v, sig_col)

    sigma_full = jnp.broadcast_to(sig_col, (B, H, L, S))
    return V, series, prior, sigma_full


def _reference(queries, keys, values, sigma, scale):
    """Plain-JAX reimplementation of the PyTorch forward, for verification."""
    B, L, H, E = queries.shape
    scores = jnp.einsum('blhe,bshe->bhls', queries, keys)
    mask = jnp.triu(jnp.ones((L, L), dtype=bool), k=1)
    scores = jnp.where(mask[None, None], -jnp.inf, scores)
    attn = scale * scores
    sig = jnp.transpose(sigma, (0, 2, 1))
    sig = jax.nn.sigmoid(sig * 5.0) + 1e-5
    sig = jnp.power(3.0, sig) - 1.0
    sig = jnp.repeat(sig[..., None], L, axis=-1)
    dist = jnp.abs(jnp.arange(L)[:, None] - jnp.arange(L)[None, :]).astype(jnp.float32)
    prior = 1.0 / (math.sqrt(2 * math.pi) * sig) * jnp.exp(-dist ** 2 / 2.0 / sig ** 2)
    series = jax.nn.softmax(attn, axis=-1)
    V = jnp.einsum('bhls,bshd->blhd', series, values)
    return V, series, prior, sig


if __name__ == "__main__":
    # Small shapes consistent with the module: win_size L=S=8, B=2, H=4, E=D=32.
    B, L, H, E = 2, 8, 4, 32
    D = 32
    key = jax.random.PRNGKey(0)
    kq, kk, kv, ks = jax.random.split(key, 4)
    queries = jax.random.normal(kq, (B, L, H, E), dtype=jnp.float32)
    keys = jax.random.normal(kk, (B, L, H, E), dtype=jnp.float32)
    values = jax.random.normal(kv, (B, L, H, D), dtype=jnp.float32)
    sigma = jax.random.normal(ks, (B, L, H), dtype=jnp.float32)

    V, series, prior, sigma_full = anomaly_attention(queries, keys, values, sigma)
    jax.block_until_ready((V, series, prior, sigma_full))

    # Silent correctness check against the plain-JAX reference.
    scale = 1.0 / math.sqrt(E)
    V_r, series_r, prior_r, sigma_r = _reference(queries, keys, values, sigma, scale)
    assert jnp.allclose(V, V_r, atol=1e-4, rtol=1e-4)
    assert jnp.allclose(series, series_r, atol=1e-5, rtol=1e-4)
    assert jnp.allclose(prior, prior_r, atol=1e-4, rtol=1e-4)
    assert jnp.allclose(sigma_full, sigma_r, atol=1e-6, rtol=1e-6)

    print("KERNEL_OK")
</pallas_src>

<mosaic_0001>
module attributes {stable_mosaic.version = 11 : i64} {
  func.func @_anomaly_attention_kernel(%arg0: i32, %arg1: memref<1x8x4x32xf32, #tpu.memory_space<vmem>>, %arg2: memref<1x8x4x32xf32, #tpu.memory_space<vmem>>, %arg3: memref<1x8x4x32xf32, #tpu.memory_space<vmem>>, %arg4: memref<1x4x8x1xf32, #tpu.memory_space<vmem>>, %arg5: memref<1x8x4x32xf32, #tpu.memory_space<vmem>>, %arg6: memref<1x4x8x8xf32, #tpu.memory_space<vmem>>, %arg7: memref<1x4x8x8xf32, #tpu.memory_space<vmem>>) attributes {dimension_semantics = [#tpu.dimension_semantics<parallel>], iteration_bounds = array<i64: 2>, scalar_prefetch = 0 : i64, scratch_operands = 0 : i64, tpu.core_type = #tpu.core_type<tc>, window_params = [{transform_indices = @transform_0, window_bounds = array<i64: 1, 8, 4, 32>}, {transform_indices = @transform_1, window_bounds = array<i64: 1, 8, 4, 32>}, {transform_indices = @transform_2, window_bounds = array<i64: 1, 8, 4, 32>}, {transform_indices = @transform_3, window_bounds = array<i64: 1, 4, 8, 1>}, {transform_indices = @transform_4, window_bounds = array<i64: 1, 8, 4, 32>}, {transform_indices = @transform_5, window_bounds = array<i64: 1, 4, 8, 8>}, {transform_indices = @transform_6, window_bounds = array<i64: 1, 4, 8, 8>}]} {
    %0 = tpu.iota {dimensions = array<i32: 0>} : vector<8x8xi32>
    %1 = tpu.iota {dimensions = array<i32: 1>} : vector<8x8xi32>
    %2 = arith.cmpi sgt, %1, %0 : vector<8x8xi32>
    %3 = vector.shape_cast %2 : vector<8x8xi1> to vector<1x8x8xi1>
    %4 = arith.subi %0, %1 : vector<8x8xi32>
    %5 = arith.sitofp %4 : vector<8x8xi32> to vector<8x8xf32>
    %6 = arith.mulf %5, %5 : vector<8x8xf32>
    %7 = vector.shape_cast %6 : vector<8x8xf32> to vector<1x8x8xf32>
    %cst = arith.constant 0.000000e+00 : f32
    %8 = vector.broadcast %cst : f32 to vector<1x8x8xf32>
    %9 = arith.subf %8, %7 : vector<1x8x8xf32>
    %c0 = arith.constant 0 : index
    %c0_0 = arith.constant 0 : index
    %c0_1 = arith.constant 0 : index
    %c0_2 = arith.constant 0 : index
    %10 = vector.load %arg1[%c0, %c0_0, %c0_1, %c0_2] : memref<1x8x4x32xf32, #tpu.memory_space<vmem>>, vector<1x8x1x32xf32>
    %11 = vector.shape_cast %10 : vector<1x8x1x32xf32> to vector<1x8x32xf32>
    %cst_3 = arith.constant 0.176776692 : f32
    %12 = vector.broadcast %cst_3 : f32 to vector<1x8x32xf32>
    %13 = arith.mulf %11, %12 : vector<1x8x32xf32>
    %c0_4 = arith.constant 0 : index
    %c0_5 = arith.constant 0 : index
    %c0_6 = arith.constant 0 : index
    %c0_7 = arith.constant 0 : index
    %14 = vector.load %arg2[%c0_4, %c0_5, %c0_6, %c0_7] : memref<1x8x4x32xf32, #tpu.memory_space<vmem>>, vector<1x8x1x32xf32>
    %15 = vector.shape_cast %14 : vector<1x8x1x32xf32> to vector<1x8x32xf32>
    %c0_8 = arith.constant 0 : index
    %c0_9 = arith.constant 0 : index
    %c0_10 = arith.constant 0 : index
    %c0_11 = arith.constant 0 : index
    %16 = vector.load %arg3[%c0_8, %c0_9, %c0_10, %c0_11] : memref<1x8x4x32xf32, #tpu.memory_space<vmem>>, vector<1x8x1x32xf32>
    %17 = vector.shape_cast %16 : vector<1x8x1x32xf32> to vector<1x8x32xf32>
    %c0_12 = arith.constant 0 : index
    %c0_13 = arith.constant 0 : index
    %c0_14 = arith.constant 0 : index
    %c0_15 = arith.constant 0 : index
    %18 = vector.load %arg4[%c0_12, %c0_13, %c0_14, %c0_15] : memref<1x4x8x1xf32, #tpu.memory_space<vmem>>, vector<1x1x8x1xf32>
    %19 = vector.shape_cast %18 : vector<1x1x8x1xf32> to vector<1x8x1xf32>
    "tpu.trace_start"() <{level = 10 : i32, message = "ble,bse->bls"}> : () -> ()
    %cst_16 = arith.constant dense<0.000000e+00> : vector<1x8x8xf32>
    %20 = tpu.matmul %13, %15, %cst_16 {dimension_numbers = #tpu.dot_dimension_numbers<[2], [2], [1], [1], [0, 0, 0, 1, 1, 1], [0], [0]>} : vector<1x8x32xf32>, vector<1x8x32xf32>, vector<1x8x8xf32> -> vector<1x8x8xf32>
    %cst_17 = arith.constant 0xFF800000 : f32
    "tpu.trace_stop"() : () -> ()
    %21 = vector.broadcast %cst_17 : f32 to vector<1x8x8xf32>
    %22 = arith.select %3, %21, %20 : vector<1x8x8xi1>, vector<1x8x8xf32>
    %cst_18 = arith.constant dense<0xFF800000> : vector<1x8xf32>
    %23 = vector.multi_reduction <maximumf>, %22, %cst_18 [2] : vector<1x8x8xf32> to vector<1x8xf32>
    %24 = vector.shape_cast %23 : vector<1x8xf32> to vector<1x8x1xf32>
    %25 = vector.broadcast %24 : vector<1x8x1xf32> to vector<1x8x8xf32>
    %26 = arith.subf %22, %25 : vector<1x8x8xf32>
    %27 = math.exp %26 : vector<1x8x8xf32>
    %cst_19 = arith.constant dense<0.000000e+00> : vector<1x8xf32>
    %28 = vector.multi_reduction <add>, %27, %cst_19 [2] : vector<1x8x8xf32> to vector<1x8xf32>
    %29 = vector.shape_cast %28 : vector<1x8xf32> to vector<1x8x1xf32>
    %cst_20 = arith.constant 1.000000e+00 : f32
    %30 = vector.broadcast %cst_20 : f32 to vector<1x8x1xf32>
    %31 = arith.divf %30, %29 : vector<1x8x1xf32>
    %32 = vector.broadcast %31 : vector<1x8x1xf32> to vector<1x8x8xf32>
    %33 = arith.mulf %27, %32 : vector<1x8x8xf32>
    %cst_21 = arith.constant 1.000000e+00 : f32
    %34 = vector.broadcast %cst_21 : f32 to vector<1x8x1xf32>
    %35 = arith.divf %34, %19 : vector<1x8x1xf32>
    %cst_22 = arith.constant 0.398942292 : f32
    %36 = vector.broadcast %cst_22 : f32 to vector<1x8x1xf32>
    %37 = arith.mulf %36, %35 : vector<1x8x1xf32>
    %cst_23 = arith.constant 5.000000e-01 : f32
    %38 = vector.broadcast %cst_23 : f32 to vector<1x8x1xf32>
    %39 = arith.mulf %38, %35 : vector<1x8x1xf32>
    %40 = arith.mulf %39, %35 : vector<1x8x1xf32>
    %41 = vector.broadcast %40 : vector<1x8x1xf32> to vector<1x8x8xf32>
    %42 = arith.mulf %9, %41 : vector<1x8x8xf32>
    %43 = math.exp %42 : vector<1x8x8xf32>
    %44 = vector.broadcast %37 : vector<1x8x1xf32> to vector<1x8x8xf32>
    %45 = arith.mulf %44, %43 : vector<1x8x8xf32>
    "tpu.trace_start"() <{level = 10 : i32, message = "bls,bsd->bld"}> : () -> ()
    %cst_24 = arith.constant dense<0.000000e+00> : vector<1x8x32xf32>
    %46 = tpu.matmul %33, %17, %cst_24 {dimension_numbers = #tpu.dot_dimension_numbers<[2], [1], [1], [2], [0, 0, 0, 1, 1, 2], [0], [0]>} : vector<1x8x8xf32>, vector<1x8x32xf32>, vector<1x8x32xf32> -> vector<1x8x32xf32>
    "tpu.trace_stop"() : () -> ()
    %c0_25 = arith.constant 0 : index
    %c0_26 = arith.constant 0 : index
    %c0_27 = arith.constant 0 : index
    %c0_28 = arith.constant 0 : index
    %47 = vector.load %arg5[%c0_25, %c0_26, %c0_27, %c0_28] : memref<1x8x4x32xf32, #tpu.memory_space<vmem>>, vector<1x8x1x32xf32>
    %48 = vector.shape_cast %47 : vector<1x8x1x32xf32> to vector<1x8x32xf32>
    %49 = vector.shape_cast %46 : vector<1x8x32xf32> to vector<1x8x1x32xf32>
    tpu.vector_store %arg5[%c0_25, %c0_26, %c0_27, %c0_28], %49 {strides = array<i32>} : memref<1x8x4x32xf32, #tpu.memory_space<vmem>>, vector<1x8x1x32xf32>,
    %c0_29 = arith.constant 0 : index
    %c0_30 = arith.constant 0 : index
    %c0_31 = arith.constant 0 : index
    %c0_32 = arith.constant 0 : index
    %50 = vector.load %arg6[%c0_29, %c0_30, %c0_31, %c0_32] : memref<1x4x8x8xf32, #tpu.memory_space<vmem>>, vector<1x1x8x8xf32>
    %51 = vector.shape_cast %50 : vector<1x1x8x8xf32> to vector<1x8x8xf32>
    %52 = vector.shape_cast %33 : vector<1x8x8xf32> to vector<1x1x8x8xf32>
    tpu.vector_store %arg6[%c0_29, %c0_30, %c0_31, %c0_32], %52 {strides = array<i32>} : memref<1x4x8x8xf32, #tpu.memory_space<vmem>>, vector<1x1x8x8xf32>,
    %c0_33 = arith.constant 0 : index
    %c0_34 = arith.constant 0 : index
    %c0_35 = arith.constant 0 : index
    %c0_36 = arith.constant 0 : index
    %53 = vector.load %arg7[%c0_33, %c0_34, %c0_35, %c0_36] : memref<1x4x8x8xf32, #tpu.memory_space<vmem>>, vector<1x1x8x8xf32>
    %54 = vector.shape_cast %53 : vector<1x1x8x8xf32> to vector<1x8x8xf32>
    %55 = vector.shape_cast %45 : vector<1x8x8xf32> to vector<1x1x8x8xf32>
    tpu.vector_store %arg7[%c0_33, %c0_34, %c0_35, %c0_36], %55 {strides = array<i32>} : memref<1x4x8x8xf32, #tpu.memory_space<vmem>>, vector<1x1x8x8xf32>,
    %c0_37 = arith.constant 0 : index
    %c0_38 = arith.constant 0 : index
    %c1 = arith.constant 1 : index
    %c0_39 = arith.constant 0 : index
    %56 = vector.load %arg1[%c0_37, %c0_38, %c1, %c0_39] : memref<1x8x4x32xf32, #tpu.memory_space<vmem>>, vector<1x8x1x32xf32>
    %57 = vector.shape_cast %56 : vector<1x8x1x32xf32> to vector<1x8x32xf32>
    %cst_40 = arith.constant 0.176776692 : f32
    %58 = vector.broadcast %cst_40 : f32 to vector<1x8x32xf32>
    %59 = arith.mulf %57, %58 : vector<1x8x32xf32>
    %c0_41 = arith.constant 0 : index
    %c0_42 = arith.constant 0 : index
    %c1_43 = arith.constant 1 : index
    %c0_44 = arith.constant 0 : index
    %60 = vector.load %arg2[%c0_41, %c0_42, %c1_43, %c0_44] : memref<1x8x4x32xf32, #tpu.memory_space<vmem>>, vector<1x8x1x32xf32>
    %61 = vector.shape_cast %60 : vector<1x8x1x32xf32> to vector<1x8x32xf32>
    %c0_45 = arith.constant 0 : index
    %c0_46 = arith.constant 0 : index
    %c1_47 = arith.constant 1 : index
    %c0_48 = arith.constant 0 : index
    %62 = vector.load %arg3[%c0_45, %c0_46, %c1_47, %c0_48] : memref<1x8x4x32xf32, #tpu.memory_space<vmem>>, vector<1x8x1x32xf32>
    %63 = vector.shape_cast %62 : vector<1x8x1x32xf32> to vector<1x8x32xf32>
    %c0_49 = arith.constant 0 : index
    %c1_50 = arith.constant 1 : index
    %c0_51 = arith.constant 0 : index
    %c0_52 = arith.constant 0 : index
    %64 = vector.load %arg4[%c0_49, %c1_50, %c0_51, %c0_52] : memref<1x4x8x1xf32, #tpu.memory_space<vmem>>, vector<1x1x8x1xf32>
    %65 = vector.shape_cast %64 : vector<1x1x8x1xf32> to vector<1x8x1xf32>
    "tpu.trace_start"() <{level = 10 : i32, message = "ble,bse->bls"}> : () -> ()
    %cst_53 = arith.constant dense<0.000000e+00> : vector<1x8x8xf32>
    %66 = tpu.matmul %59, %61, %cst_53 {dimension_numbers = #tpu.dot_dimension_numbers<[2], [2], [1], [1], [0, 0, 0, 1, 1, 1], [0], [0]>} : vector<1x8x32xf32>, vector<1x8x32xf32>, vector<1x8x8xf32> -> vector<1x8x8xf32>
    %cst_54 = arith.constant 0xFF800000 : f32
    "tpu.trace_stop"() : () -> ()
    %67 = vector.broadcast %cst_54 : f32 to vector<1x8x8xf32>
    %68 = arith.select %3, %67, %66 : vector<1x8x8xi1>, vector<1x8x8xf32>
    %cst_55 = arith.constant dense<0xFF800000> : vector<1x8xf32>
    %69 = vector.multi_reduction <maximumf>, %68, %cst_55 [2] : vector<1x8x8xf32> to vector<1x8xf32>
    %70 = vector.shape_cast %69 : vector<1x8xf32> to vector<1x8x1xf32>
    %71 = vector.broadcast %70 : vector<1x8x1xf32> to vector<1x8x8xf32>
    %72 = arith.subf %68, %71 : vector<1x8x8xf32>
    %73 = math.exp %72 : vector<1x8x8xf32>
    %cst_56 = arith.constant dense<0.000000e+00> : vector<1x8xf32>
    %74 = vector.multi_reduction <add>, %73, %cst_56 [2] : vector<1x8x8xf32> to vector<1x8xf32>
    %75 = vector.shape_cast %74 : vector<1x8xf32> to vector<1x8x1xf32>
    %cst_57 = arith.constant 1.000000e+00 : f32
    %76 = vector.broadcast %cst_57 : f32 to vector<1x8x1xf32>
    %77 = arith.divf %76, %75 : vector<1x8x1xf32>
    %78 = vector.broadcast %77 : vector<1x8x1xf32> to vector<1x8x8xf32>
    %79 = arith.mulf %73, %78 : vector<1x8x8xf32>
    %cst_58 = arith.constant 1.000000e+00 : f32
    %80 = vector.broadcast %cst_58 : f32 to vector<1x8x1xf32>
    %81 = arith.divf %80, %65 : vector<1x8x1xf32>
    %cst_59 = arith.constant 0.398942292 : f32
    %82 = vector.broadcast %cst_59 : f32 to vector<1x8x1xf32>
    %83 = arith.mulf %82, %81 : vector<1x8x1xf32>
    %cst_60 = arith.constant 5.000000e-01 : f32
    %84 = vector.broadcast %cst_60 : f32 to vector<1x8x1xf32>
    %85 = arith.mulf %84, %81 : vector<1x8x1xf32>
    %86 = arith.mulf %85, %81 : vector<1x8x1xf32>
    %87 = vector.broadcast %86 : vector<1x8x1xf32> to vector<1x8x8xf32>
    %88 = arith.mulf %9, %87 : vector<1x8x8xf32>
    %89 = math.exp %88 : vector<1x8x8xf32>
    %90 = vector.broadcast %83 : vector<1x8x1xf32> to vector<1x8x8xf32>
    %91 = arith.mulf %90, %89 : vector<1x8x8xf32>
    "tpu.trace_start"() <{level = 10 : i32, message = "bls,bsd->bld"}> : () -> ()
    %cst_61 = arith.constant dense<0.000000e+00> : vector<1x8x32xf32>
    %92 = tpu.matmul %79, %63, %cst_61 {dimension_numbers = #tpu.dot_dimension_numbers<[2], [1], [1], [2], [0, 0, 0, 1, 1, 2], [0], [0]>} : vector<1x8x8xf32>, vector<1x8x32xf32>, vector<1x8x32xf32> -> vector<1x8x32xf32>
    "tpu.trace_stop"() : () -> ()
    %c0_62 = arith.constant 0 : index
    %c0_63 = arith.constant 0 : index
    %c1_64 = arith.constant 1 : index
    %c0_65 = arith.constant 0 : index
    %93 = vector.load %arg5[%c0_62, %c0_63, %c1_64, %c0_65] : memref<1x8x4x32xf32, #tpu.memory_space<vmem>>, vector<1x8x1x32xf32>
    %94 = vector.shape_cast %93 : vector<1x8x1x32xf32> to vector<1x8x32xf32>
    %95 = vector.shape_cast %92 : vector<1x8x32xf32> to vector<1x8x1x32xf32>
    tpu.vector_store %arg5[%c0_62, %c0_63, %c1_64, %c0_65], %95 {strides = array<i32>} : memref<1x8x4x32xf32, #tpu.memory_space<vmem>>, vector<1x8x1x32xf32>,
    %c0_66 = arith.constant 0 : index
    %c1_67 = arith.constant 1 : index
    %c0_68 = arith.constant 0 : index
    %c0_69 = arith.constant 0 : index
    %96 = vector.load %arg6[%c0_66, %c1_67, %c0_68, %c0_69] : memref<1x4x8x8xf32, #tpu.memory_space<vmem>>, vector<1x1x8x8xf32>
    %97 = vector.shape_cast %96 : vector<1x1x8x8xf32> to vector<1x8x8xf32>
    %98 = vector.shape_cast %79 : vector<1x8x8xf32> to vector<1x1x8x8xf32>
    tpu.vector_store %arg6[%c0_66, %c1_67, %c0_68, %c0_69], %98 {strides = array<i32>} : memref<1x4x8x8xf32, #tpu.memory_space<vmem>>, vector<1x1x8x8xf32>,
    %c0_70 = arith.constant 0 : index
    %c1_71 = arith.constant 1 : index
    %c0_72 = arith.constant 0 : index
    %c0_73 = arith.constant 0 : index
    %99 = vector.load %arg7[%c0_70, %c1_71, %c0_72, %c0_73] : memref<1x4x8x8xf32, #tpu.memory_space<vmem>>, vector<1x1x8x8xf32>
    %100 = vector.shape_cast %99 : vector<1x1x8x8xf32> to vector<1x8x8xf32>
    %101 = vector.shape_cast %91 : vector<1x8x8xf32> to vector<1x1x8x8xf32>
    tpu.vector_store %arg7[%c0_70, %c1_71, %c0_72, %c0_73], %101 {strides = array<i32>} : memref<1x4x8x8xf32, #tpu.memory_space<vmem>>, vector<1x1x8x8xf32>,
    %c0_74 = arith.constant 0 : index
    %c0_75 = arith.constant 0 : index
    %c2 = arith.constant 2 : index
    %c0_76 = arith.constant 0 : index
    %102 = vector.load %arg1[%c0_74, %c0_75, %c2, %c0_76] : memref<1x8x4x32xf32, #tpu.memory_space<vmem>>, vector<1x8x1x32xf32>
    %103 = vector.shape_cast %102 : vector<1x8x1x32xf32> to vector<1x8x32xf32>
    %cst_77 = arith.constant 0.176776692 : f32
    %104 = vector.broadcast %cst_77 : f32 to vector<1x8x32xf32>
    %105 = arith.mulf %103, %104 : vector<1x8x32xf32>
    %c0_78 = arith.constant 0 : index
    %c0_79 = arith.constant 0 : index
    %c2_80 = arith.constant 2 : index
    %c0_81 = arith.constant 0 : index
    %106 = vector.load %arg2[%c0_78, %c0_79, %c2_80, %c0_81] : memref<1x8x4x32xf32, #tpu.memory_space<vmem>>, vector<1x8x1x32xf32>
    %107 = vector.shape_cast %106 : vector<1x8x1x32xf32> to vector<1x8x32xf32>
    %c0_82 = arith.constant 0 : index
    %c0_83 = arith.constant 0 : index
    %c2_84 = arith.constant 2 : index
    %c0_85 = arith.constant 0 : index
    %108 = vector.load %arg3[%c0_82, %c0_83, %c2_84, %c0_85] : memref<1x8x4x32xf32, #tpu.memory_space<vmem>>, vector<1x8x1x32xf32>
    %109 = vector.shape_cast %108 : vector<1x8x1x32xf32> to vector<1x8x32xf32>
    %c0_86 = arith.constant 0 : index
    %c2_87 = arith.constant 2 : index
    %c0_88 = arith.constant 0 : index
    %c0_89 = arith.constant 0 : index
    %110 = vector.load %arg4[%c0_86, %c2_87, %c0_88, %c0_89] : memref<1x4x8x1xf32, #tpu.memory_space<vmem>>, vector<1x1x8x1xf32>
    %111 = vector.shape_cast %110 : vector<1x1x8x1xf32> to vector<1x8x1xf32>
    "tpu.trace_start"() <{level = 10 : i32, message = "ble,bse->bls"}> : () -> ()
    %cst_90 = arith.constant dense<0.000000e+00> : vector<1x8x8xf32>
    %112 = tpu.matmul %105, %107, %cst_90 {dimension_numbers = #tpu.dot_dimension_numbers<[2], [2], [1], [1], [0, 0, 0, 1, 1, 1], [0], [0]>} : vector<1x8x32xf32>, vector<1x8x32xf32>, vector<1x8x8xf32> -> vector<1x8x8xf32>
    %cst_91 = arith.constant 0xFF800000 : f32
    "tpu.trace_stop"() : () -> ()
    %113 = vector.broadcast %cst_91 : f32 to vector<1x8x8xf32>
    %114 = arith.select %3, %113, %112 : vector<1x8x8xi1>, vector<1x8x8xf32>
    %cst_92 = arith.constant dense<0xFF800000> : vector<1x8xf32>
    %115 = vector.multi_reduction <maximumf>, %114, %cst_92 [2] : vector<1x8x8xf32> to vector<1x8xf32>
    %116 = vector.shape_cast %115 : vector<1x8xf32> to vector<1x8x1xf32>
    %117 = vector.broadcast %116 : vector<1x8x1xf32> to vector<1x8x8xf32>
    %118 = arith.subf %114, %117 : vector<1x8x8xf32>
    %119 = math.exp %118 : vector<1x8x8xf32>
    %cst_93 = arith.constant dense<0.000000e+00> : vector<1x8xf32>
    %120 = vector.multi_reduction <add>, %119, %cst_93 [2] : vector<1x8x8xf32> to vector<1x8xf32>
    %121 = vector.shape_cast %120 : vector<1x8xf32> to vector<1x8x1xf32>
    %cst_94 = arith.constant 1.000000e+00 : f32
    %122 = vector.broadcast %cst_94 : f32 to vector<1x8x1xf32>
    %123 = arith.divf %122, %121 : vector<1x8x1xf32>
    %124 = vector.broadcast %123 : vector<1x8x1xf32> to vector<1x8x8xf32>
    %125 = arith.mulf %119, %124 : vector<1x8x8xf32>
    %cst_95 = arith.constant 1.000000e+00 : f32
    %126 = vector.broadcast %cst_95 : f32 to vector<1x8x1xf32>
    %127 = arith.divf %126, %111 : vector<1x8x1xf32>
    %cst_96 = arith.constant 0.398942292 : f32
    %128 = vector.broadcast %cst_96 : f32 to vector<1x8x1xf32>
    %129 = arith.mulf %128, %127 : vector<1x8x1xf32>
    %cst_97 = arith.constant 5.000000e-01 : f32
    %130 = vector.broadcast %cst_97 : f32 to vector<1x8x1xf32>
    %131 = arith.mulf %130, %127 : vector<1x8x1xf32>
    %132 = arith.mulf %131, %127 : vector<1x8x1xf32>
    %133 = vector.broadcast %132 : vector<1x8x1xf32> to vector<1x8x8xf32>
    %134 = arith.mulf %9, %133 : vector<1x8x8xf32>
    %135 = math.exp %134 : vector<1x8x8xf32>
    %136 = vector.broadcast %129 : vector<1x8x1xf32> to vector<1x8x8xf32>
    %137 = arith.mulf %136, %135 : vector<1x8x8xf32>
    "tpu.trace_start"() <{level = 10 : i32, message = "bls,bsd->bld"}> : () -> ()
    %cst_98 = arith.constant dense<0.000000e+00> : vector<1x8x32xf32>
    %138 = tpu.matmul %125, %109, %cst_98 {dimension_numbers = #tpu.dot_dimension_numbers<[2], [1], [1], [2], [0, 0, 0, 1, 1, 2], [0], [0]>} : vector<1x8x8xf32>, vector<1x8x32xf32>, vector<1x8x32xf32> -> vector<1x8x32xf32>
    "tpu.trace_stop"() : () -> ()
    %c0_99 = arith.constant 0 : index
    %c0_100 = arith.constant 0 : index
    %c2_101 = arith.constant 2 : index
    %c0_102 = arith.constant 0 : index
    %139 = vector.load %arg5[%c0_99, %c0_100, %c2_101, %c0_102] : memref<1x8x4x32xf32, #tpu.memory_space<vmem>>, vector<1x8x1x32xf32>
    %140 = vector.shape_cast %139 : vector<1x8x1x32xf32> to vector<1x8x32xf32>
    %141 = vector.shape_cast %138 : vector<1x8x32xf32> to vector<1x8x1x32xf32>
    tpu.vector_store %arg5[%c0_99, %c0_100, %c2_101, %c0_102], %141 {strides = array<i32>} : memref<1x8x4x32xf32, #tpu.memory_space<vmem>>, vector<1x8x1x32xf32>,
    %c0_103 = arith.constant 0 : index
    %c2_104 = arith.constant 2 : index
    %c0_105 = arith.constant 0 : index
    %c0_106 = arith.constant 0 : index
    %142 = vector.load %arg6[%c0_103, %c2_104, %c0_105, %c0_106] : memref<1x4x8x8xf32, #tpu.memory_space<vmem>>, vector<1x1x8x8xf32>
    %143 = vector.shape_cast %142 : vector<1x1x8x8xf32> to vector<1x8x8xf32>
    %144 = vector.shape_cast %125 : vector<1x8x8xf32> to vector<1x1x8x8xf32>
    tpu.vector_store %arg6[%c0_103, %c2_104, %c0_105, %c0_106], %144 {strides = array<i32>} : memref<1x4x8x8xf32, #tpu.memory_space<vmem>>, vector<1x1x8x8xf32>,
    %c0_107 = arith.constant 0 : index
    %c2_108 = arith.constant 2 : index
    %c0_109 = arith.constant 0 : index
    %c0_110 = arith.constant 0 : index
    %145 = vector.load %arg7[%c0_107, %c2_108, %c0_109, %c0_110] : memref<1x4x8x8xf32, #tpu.memory_space<vmem>>, vector<1x1x8x8xf32>
    %146 = vector.shape_cast %145 : vector<1x1x8x8xf32> to vector<1x8x8xf32>
    %147 = vector.shape_cast %137 : vector<1x8x8xf32> to vector<1x1x8x8xf32>
    tpu.vector_store %arg7[%c0_107, %c2_108, %c0_109, %c0_110], %147 {strides = array<i32>} : memref<1x4x8x8xf32, #tpu.memory_space<vmem>>, vector<1x1x8x8xf32>,
    %c0_111 = arith.constant 0 : index
    %c0_112 = arith.constant 0 : index
    %c3 = arith.constant 3 : index
    %c0_113 = arith.constant 0 : index
    %148 = vector.load %arg1[%c0_111, %c0_112, %c3, %c0_113] : memref<1x8x4x32xf32, #tpu.memory_space<vmem>>, vector<1x8x1x32xf32>
    %149 = vector.shape_cast %148 : vector<1x8x1x32xf32> to vector<1x8x32xf32>
    %cst_114 = arith.constant 0.176776692 : f32
    %150 = vector.broadcast %cst_114 : f32 to vector<1x8x32xf32>
    %151 = arith.mulf %149, %150 : vector<1x8x32xf32>
    %c0_115 = arith.constant 0 : index
    %c0_116 = arith.constant 0 : index
    %c3_117 = arith.constant 3 : index
    %c0_118 = arith.constant 0 : index
    %152 = vector.load %arg2[%c0_115, %c0_116, %c3_117, %c0_118] : memref<1x8x4x32xf32, #tpu.memory_space<vmem>>, vector<1x8x1x32xf32>
    %153 = vector.shape_cast %152 : vector<1x8x1x32xf32> to vector<1x8x32xf32>
    %c0_119 = arith.constant 0 : index
    %c0_120 = arith.constant 0 : index
    %c3_121 = arith.constant 3 : index
    %c0_122 = arith.constant 0 : index
    %154 = vector.load %arg3[%c0_119, %c0_120, %c3_121, %c0_122] : memref<1x8x4x32xf32, #tpu.memory_space<vmem>>, vector<1x8x1x32xf32>
    %155 = vector.shape_cast %154 : vector<1x8x1x32xf32> to vector<1x8x32xf32>
    %c0_123 = arith.constant 0 : index
    %c3_124 = arith.constant 3 : index
    %c0_125 = arith.constant 0 : index
    %c0_126 = arith.constant 0 : index
    %156 = vector.load %arg4[%c0_123, %c3_124, %c0_125, %c0_126] : memref<1x4x8x1xf32, #tpu.memory_space<vmem>>, vector<1x1x8x1xf32>
    %157 = vector.shape_cast %156 : vector<1x1x8x1xf32> to vector<1x8x1xf32>
    "tpu.trace_start"() <{level = 10 : i32, message = "ble,bse->bls"}> : () -> ()
    %cst_127 = arith.constant dense<0.000000e+00> : vector<1x8x8xf32>
    %158 = tpu.matmul %151, %153, %cst_127 {dimension_numbers = #tpu.dot_dimension_numbers<[2], [2], [1], [1], [0, 0, 0, 1, 1, 1], [0], [0]>} : vector<1x8x32xf32>, vector<1x8x32xf32>, vector<1x8x8xf32> -> vector<1x8x8xf32>
    %cst_128 = arith.constant 0xFF800000 : f32
    "tpu.trace_stop"() : () -> ()
    %159 = vector.broadcast %cst_128 : f32 to vector<1x8x8xf32>
    %160 = arith.select %3, %159, %158 : vector<1x8x8xi1>, vector<1x8x8xf32>
    %cst_129 = arith.constant dense<0xFF800000> : vector<1x8xf32>
    %161 = vector.multi_reduction <maximumf>, %160, %cst_129 [2] : vector<1x8x8xf32> to vector<1x8xf32>
    %162 = vector.shape_cast %161 : vector<1x8xf32> to vector<1x8x1xf32>
    %163 = vector.broadcast %162 : vector<1x8x1xf32> to vector<1x8x8xf32>
    %164 = arith.subf %160, %163 : vector<1x8x8xf32>
    %165 = math.exp %164 : vector<1x8x8xf32>
    %cst_130 = arith.constant dense<0.000000e+00> : vector<1x8xf32>
    %166 = vector.multi_reduction <add>, %165, %cst_130 [2] : vector<1x8x8xf32> to vector<1x8xf32>
    %167 = vector.shape_cast %166 : vector<1x8xf32> to vector<1x8x1xf32>
    %cst_131 = arith.constant 1.000000e+00 : f32
    %168 = vector.broadcast %cst_131 : f32 to vector<1x8x1xf32>
    %169 = arith.divf %168, %167 : vector<1x8x1xf32>
    %170 = vector.broadcast %169 : vector<1x8x1xf32> to vector<1x8x8xf32>
    %171 = arith.mulf %165, %170 : vector<1x8x8xf32>
    %cst_132 = arith.constant 1.000000e+00 : f32
    %172 = vector.broadcast %cst_132 : f32 to vector<1x8x1xf32>
    %173 = arith.divf %172, %157 : vector<1x8x1xf32>
    %cst_133 = arith.constant 0.398942292 : f32
    %174 = vector.broadcast %cst_133 : f32 to vector<1x8x1xf32>
    %175 = arith.mulf %174, %173 : vector<1x8x1xf32>
    %cst_134 = arith.constant 5.000000e-01 : f32
    %176 = vector.broadcast %cst_134 : f32 to vector<1x8x1xf32>
    %177 = arith.mulf %176, %173 : vector<1x8x1xf32>
    %178 = arith.mulf %177, %173 : vector<1x8x1xf32>
    %179 = vector.broadcast %178 : vector<1x8x1xf32> to vector<1x8x8xf32>
    %180 = arith.mulf %9, %179 : vector<1x8x8xf32>
    %181 = math.exp %180 : vector<1x8x8xf32>
    %182 = vector.broadcast %175 : vector<1x8x1xf32> to vector<1x8x8xf32>
    %183 = arith.mulf %182, %181 : vector<1x8x8xf32>
    "tpu.trace_start"() <{level = 10 : i32, message = "bls,bsd->bld"}> : () -> ()
    %cst_135 = arith.constant dense<0.000000e+00> : vector<1x8x32xf32>
    %184 = tpu.matmul %171, %155, %cst_135 {dimension_numbers = #tpu.dot_dimension_numbers<[2], [1], [1], [2], [0, 0, 0, 1, 1, 2], [0], [0]>} : vector<1x8x8xf32>, vector<1x8x32xf32>, vector<1x8x32xf32> -> vector<1x8x32xf32>
    "tpu.trace_stop"() : () -> ()
    %c0_136 = arith.constant 0 : index
    %c0_137 = arith.constant 0 : index
    %c3_138 = arith.constant 3 : index
    %c0_139 = arith.constant 0 : index
    %185 = vector.load %arg5[%c0_136, %c0_137, %c3_138, %c0_139] : memref<1x8x4x32xf32, #tpu.memory_space<vmem>>, vector<1x8x1x32xf32>
    %186 = vector.shape_cast %185 : vector<1x8x1x32xf32> to vector<1x8x32xf32>
    %187 = vector.shape_cast %184 : vector<1x8x32xf32> to vector<1x8x1x32xf32>
    tpu.vector_store %arg5[%c0_136, %c0_137, %c3_138, %c0_139], %187 {strides = array<i32>} : memref<1x8x4x32xf32, #tpu.memory_space<vmem>>, vector<1x8x1x32xf32>,
    %c0_140 = arith.constant 0 : index
    %c3_141 = arith.constant 3 : index
    %c0_142 = arith.constant 0 : index
    %c0_143 = arith.constant 0 : index
    %188 = vector.load %arg6[%c0_140, %c3_141, %c0_142, %c0_143] : memref<1x4x8x8xf32, #tpu.memory_space<vmem>>, vector<1x1x8x8xf32>
    %189 = vector.shape_cast %188 : vector<1x1x8x8xf32> to vector<1x8x8xf32>
    %190 = vector.shape_cast %171 : vector<1x8x8xf32> to vector<1x1x8x8xf32>
    tpu.vector_store %arg6[%c0_140, %c3_141, %c0_142, %c0_143], %190 {strides = array<i32>} : memref<1x4x8x8xf32, #tpu.memory_space<vmem>>, vector<1x1x8x8xf32>,
    %c0_144 = arith.constant 0 : index
    %c3_145 = arith.constant 3 : index
    %c0_146 = arith.constant 0 : index
    %c0_147 = arith.constant 0 : index
    %191 = vector.load %arg7[%c0_144, %c3_145, %c0_146, %c0_147] : memref<1x4x8x8xf32, #tpu.memory_space<vmem>>, vector<1x1x8x8xf32>
    %192 = vector.shape_cast %191 : vector<1x1x8x8xf32> to vector<1x8x8xf32>
    %193 = vector.shape_cast %183 : vector<1x8x8xf32> to vector<1x1x8x8xf32>
    tpu.vector_store %arg7[%c0_144, %c3_145, %c0_146, %c0_147], %193 {strides = array<i32>} : memref<1x4x8x8xf32, #tpu.memory_space<vmem>>, vector<1x1x8x8xf32>,
    return
  }
  func.func @transform_0(%arg0: i32) -> (i32, i32, i32, i32) {
    %c0_i32 = arith.constant 0 : i32
    %c0_i32_0 = arith.constant 0 : i32
    %c0_i32_1 = arith.constant 0 : i32
    %c0_i32_2 = arith.constant 0 : i32
    return %arg0, %c0_i32, %c0_i32_0, %c0_i32_1 : i32, i32, i32, i32
  }
  func.func @transform_1(%arg0: i32) -> (i32, i32, i32, i32) {
    %c0_i32 = arith.constant 0 : i32
    %c0_i32_0 = arith.constant 0 : i32
    %c0_i32_1 = arith.constant 0 : i32
    %c0_i32_2 = arith.constant 0 : i32
    return %arg0, %c0_i32, %c0_i32_0, %c0_i32_1 : i32, i32, i32, i32
  }
  func.func @transform_2(%arg0: i32) -> (i32, i32, i32, i32) {
    %c0_i32 = arith.constant 0 : i32
    %c0_i32_0 = arith.constant 0 : i32
    %c0_i32_1 = arith.constant 0 : i32
    %c0_i32_2 = arith.constant 0 : i32
    return %arg0, %c0_i32, %c0_i32_0, %c0_i32_1 : i32, i32, i32, i32
  }
  func.func @transform_3(%arg0: i32) -> (i32, i32, i32, i32) {
    %c0_i32 = arith.constant 0 : i32
    %c0_i32_0 = arith.constant 0 : i32
    %c0_i32_1 = arith.constant 0 : i32
    %c0_i32_2 = arith.constant 0 : i32
    return %arg0, %c0_i32, %c0_i32_0, %c0_i32_1 : i32, i32, i32, i32
  }
  func.func @transform_4(%arg0: i32) -> (i32, i32, i32, i32) {
    %c0_i32 = arith.constant 0 : i32
    %c0_i32_0 = arith.constant 0 : i32
    %c0_i32_1 = arith.constant 0 : i32
    %c0_i32_2 = arith.constant 0 : i32
    return %arg0, %c0_i32, %c0_i32_0, %c0_i32_1 : i32, i32, i32, i32
  }
  func.func @transform_5(%arg0: i32) -> (i32, i32, i32, i32) {
    %c0_i32 = arith.constant 0 : i32
    %c0_i32_0 = arith.constant 0 : i32
    %c0_i32_1 = arith.constant 0 : i32
    %c0_i32_2 = arith.constant 0 : i32
    return %arg0, %c0_i32, %c0_i32_0, %c0_i32_1 : i32, i32, i32, i32
  }
  func.func @transform_6(%arg0: i32) -> (i32, i32, i32, i32) {
    %c0_i32 = arith.constant 0 : i32
    %c0_i32_0 = arith.constant 0 : i32
    %c0_i32_1 = arith.constant 0 : i32
    %c0_i32_2 = arith.constant 0 : i32
    return %arg0, %c0_i32, %c0_i32_0, %c0_i32_1 : i32, i32, i32, i32
  }
}

</mosaic_0001>

<bundles_post_ra>
// kernel: tpu_custom_call.1
= control target key start
LH: loop header
LB: loop body
LE: loop exit
PB: predicated region body
PF: predicated region fallthrough
CT: control target
= control target key end

     0   :  { %s3226_s0 = inlined_call_operand.vmem [shape: f32[2,8,4,32], index: 0, kind: input, shape index: {}]   ;;  %s3227_s1 = inlined_call_operand.hbm [shape: f32[2,8,4,32], index: 1, kind: input, shape index: {}]   ;;  %s3228_s2 = inlined_call_operand.hbm [shape: f32[2,8,4,32], index: 2, kind: input, shape index: {}]   ;;  %s3229_s3 = inlined_call_operand.vmem [shape: f32[2,4,8,1], index: 3, kind: input, shape index: {}]   ;;  %s3230_s4 = inlined_call_operand.hbm [shape: f32[2,8,4,32], index: 4, kind: output, shape index: {0}]   ;;  %s3231_s5 = inlined_call_operand.hbm [shape: f32[2,4,8,8], index: 5, kind: output, shape index: {1}]   ;;  %s3232_s6 = inlined_call_operand.hbm [shape: f32[2,4,8,8], index: 6, kind: output, shape index: {2}]  }
   0x1   :  { %3237 = sst [smem:[#allocation15_spill]] %s3227_s1 }
   0x2   :  { %12 = vsyncpa [#allocation3], 0 }
   0x3   :  { %14 = vsyncpa [#allocation3 + $0x1], 0 }
   0x4   :  { %15 = vsyncpa [#allocation6], 0 }
   0x5   :  { %17 = vsyncpa [#allocation6 + $0x1], 0 }
   0x6   :  { %18 = vsyncpa [#allocation4], 0 }
   0x7   :  { %20 = vsyncpa [#allocation4 + $0x1], 0 }
   0x8   :  { %21 = vsyncpa [#allocation9], 0 }
   0x9   :  { %23 = vsyncpa [#allocation9 + $0x1], 0  ;;  %s2482_s21 = smov 0   ;;  %s2484_s22 = smov 0  }
   0xa   :  { %s2486_s23 = smov 0   ;;  %s2488_s24 = smov 0  }
   0xb LB: > { %s2503_s25 = sadd.s32 4294967295, %s2430_s24   ;;  %s3233_s26 = sadd.s32 4294967294, %s2430_s24   ;;  %s2430_s24 = sphi %s2488_s24, %s3254_s24   ;;  %s2426_s23 = sphi %s2486_s23, %s3253_s23   ;;  %s2422_s22 = sphi %s2484_s22, %s3252_s22   ;;  %s2418_s21 = sphi %s2482_s21, %s3251_s21  }
   0xc   : > { %s2507_s27 = sadd.s32 1, %s2430_s24   ;;  %s62_s28 = sadd.s32 1, %s2426_s23 }
   0xd   : > { %s59_s29 = ssub.s32 %s2430_s24, %s2507_s27  ;;  %p69_p0 = scmp.ne.s32.totalorder %s2426_s23, %s2422_s22 }
   0xe   : > { %p60_p1 = scmp.eq.s32.totalorder %s59_s29, 0  ;;  %p70_p2 = scmp.eq.s32.totalorder %s2430_s24, 0 }
   0xf   : > { %p75_p3 = scmp.ne.s32.totalorder %s2422_s22, %s2418_s21  ;;  %p76_p4 = scmp.eq.s32.totalorder %s2503_s25, 0 }
  0x10   : > { %s2519_s30 = scalar_select %p60_p1, %s2426_s23, %s62_s28  }
  0x11   : > { %p2521_p5 = por %p70_p2, %p69_p0  ;;  %p2525_p6 = por %p76_p4, %p75_p3 }
  0x12   : > { %p151_p7 = scmp.eq.s32.totalorder %s2503_s25, 1  ;;  %p157_p8 = scmp.eq.s32.totalorder %s3233_s26, 1 }
  0x13   : > { %s3239_s8 = scalar_select %p2525_p6, 1, 0 }
  0x14   : > { %p2162_p10 = scmp.lt.s32.totalorder %s2430_s24, 2  ;;  %p2534_p11 = por %p151_p7, %p69_p0 }
  0x15   : > { %p2538_p12 = por %p157_p8, %p75_p3  ;;  %s2543_s11 = sand.u32 1, %s2426_s23  }
  0x16   : > { %s3240_s9 = scalar_select %p2534_p11, 1, 0 }
  0x17   : > { %s3241_s10 = scalar_select %p2538_p12, 1, 0 }
  0x18   : > { %s2072_s12 = sshll.u32 %s2430_s24, 9  ;;  %s2024_s13 = sshll.u32 %s2543_s11, 5 }
  0x19   : > { %s3242_s1 = sld [smem:[#allocation15_spill]]  ;;  %s241_s17 = scalar_lea.vmem [#allocation2], %s2024_s13 }
  0x1a   : > { %s248_s18 = sshll.u32 %s241_s17, 4  ;;  %p2558_p13 = pnand %p2162_p10, %p2521_p5  ;;  %s2562_s18 = int_to_ptr.vmem [resolvable:$true] %s248_s18 }
  0x1b   : > { %s238_s20 = scalar_lea.sflag [#allocation3], %s2543_s11 }
  0x1c   : > { %p2242_p1 = pneg %p2558_p13 }
  0x1f   : > { %s2552_s16 = scalar_lea.hbm %s3242_s1, %s2072_s12  ;;  %s2245_s7 = scalar_lea.hbm %s3242_s1, 1024 }
  0x20   : > { %s2240_s28 = scalar_lea.hbm %s2552_s16, 512  ;;  %p2246_p4 = scmp.lt.u32.totalorder %s2552_s16, %s3242_s1 }
  0x21   : > { %p2241_p0 = scmp.ne.s32.totalorder %s2552_s16, %s2240_s28  ;;  %p2247_p5 = scmp.lt.u32.totalorder %s2245_s7, %s2240_s28 }
  0x22   : > { %p2249_p8 = scmp.lt.u32.totalorder %s2240_s28, %s2552_s16 }
  0x23   : > { %p2243_p2 = pnand %p2242_p1, %p2241_p0  ;;  %p2248_p7 = por %p2247_p5, %p2246_p4 }
  0x25   : > { %p2244_p3 = pneg %p2243_p2  ;;  %p2250_p10 = por %p2249_p8, %p2248_p7 }
  0x27   : > { %p2251_p9 = pnand %p2250_p10, %p2244_p3 }
  0x29   : > { %2254 = shalt.err (!%p2251_p9)
}
  0x2a   : > { %s2255_s26 = scalar_lea.vmem %s2562_s18, 512  ;;  %s2432_s29 = smov [#allocation2]  }
  0x2b   : > { %p2256_p0 = scmp.ne.s32.totalorder %s2562_s18, %s2255_s26  ;;  %s2260_s14 = sshll.u32 %s2432_s29, 4  ;;  %s2261_s14 = int_to_ptr.vmem [resolvable:$false] %s2260_s14 }
  0x2c   : > { %s2262_s15 = scalar_lea.vmem %s2261_s14, 1024  ;;  %p2263_p11 = scmp.lt.s32.totalorder %s2562_s18, %s2261_s14 }
  0x2d   : > { %p2258_p2 = pnand %p2256_p0, %p2242_p1  ;;  %p2264_p4 = scmp.lt.s32.totalorder %s2262_s15, %s2255_s26 }
  0x2f   : > { %p2259_p12 = pneg %p2258_p2  ;;  %p2265_p5 = por %p2264_p4, %p2263_p11 }
  0x31   : > { %p2266_p7 = pnand %p2265_p5, %p2259_p12 }
  0x33   : > { %2269 = shalt.err (!%p2266_p7)
}
  0x34   : > { %s3235_s28 = smov 64   ;;  %s2434_s7 = smov 4  }
  0x35   : > { %2148 = dma.hbm_to_vmem [thread:$0]  (!%p2558_p13), %s2552_s16, 512, %s2562_s18, %s238_s20, %s3235_s28, %s3235_s28, %s2434_s7  }
  0x36   : > { %p2030_p9 = scmp.ge.s32.totalorder %s2430_s24, 1  ;;  %p285_p11 = scmp.lt.s32.totalorder %s2430_s24, 3 }
  0x37   : > { %s2606_s14 = scalar_lea.hbm %s3228_s2, %s2072_s12  ;;  %s262_s15 = scalar_lea.vmem [#allocation5], %s2024_s13 }
  0x38   : > { %p2597_p12 = pnand %p2030_p9, %p285_p11  ;;  %s269_s1 = sshll.u32 %s262_s15, 4  ;;  %s2610_s1 = int_to_ptr.vmem [resolvable:$true] %s269_s1 }
  0x39   : > { %s259_s16 = scalar_lea.sflag [#allocation6], %s2543_s11  ;;  %s2270_s18 = scalar_lea.hbm %s2606_s14, 512 }
  0x3a   : > { %p2271_p3 = scmp.ne.s32.totalorder %s2606_s14, %s2270_s18  ;;  %s2275_s12 = scalar_lea.hbm %s3228_s2, 1024 }
  0x3b   : > { %p2276_p0 = scmp.lt.u32.totalorder %s2606_s14, %s3228_s2  ;;  %p2277_p2 = scmp.lt.u32.totalorder %s2275_s12, %s2270_s18 }
  0x3c   : > { %p2273_p8 = pnand %p2271_p3, %p2242_p1  ;;  %p2279_p5 = scmp.lt.u32.totalorder %s2270_s18, %s2606_s14 }
  0x3d   : > { %p2278_p4 = por %p2277_p2, %p2276_p0 }
  0x3e   : > { %p2274_p10 = pneg %p2273_p8 }
  0x3f   : > { %p2280_p7 = por %p2279_p5, %p2278_p4 }
  0x41   : > { %p2281_p9 = pnand %p2280_p7, %p2274_p10 }
  0x43   : > { %2284 = shalt.err (!%p2281_p9)
}
  0x44   : > { %s2285_s13 = scalar_lea.vmem %s2610_s1, 512  ;;  %s2435_s15 = smov [#allocation5]  }
  0x45   : > { %p2286_p11 = scmp.ne.s32.totalorder %s2610_s1, %s2285_s13  ;;  %s2290_s20 = sshll.u32 %s2435_s15, 4  ;;  %s2291_s20 = int_to_ptr.vmem [resolvable:$false] %s2290_s20 }
  0x46   : > { %s2292_s28 = scalar_lea.vmem %s2291_s20, 1024  ;;  %p2293_p6 = scmp.lt.s32.totalorder %s2610_s1, %s2291_s20 }
  0x47   : > { %p2288_p3 = pnand %p2286_p11, %p2242_p1  ;;  %p2294_p0 = scmp.lt.s32.totalorder %s2292_s28, %s2285_s13 }
  0x49   : > { %p2289_p8 = pneg %p2288_p3  ;;  %p2295_p2 = por %p2294_p0, %p2293_p6 }
  0x4b   : > { %p2296_p4 = pnand %p2295_p2, %p2289_p8 }
  0x4d   : > { %2299 = shalt.err (!%p2296_p4)
}
  0x4e   : > { %s3245_s18 = smov 64   ;;  %289 = sbr.rel (%p2597_p12) target bundleno = 1413 (0x585), region = 36 }
  0x4f   : > { %2151 = dma.hbm_to_vmem [thread:$0]  (!%p2558_p13), %s2606_s14, 512, %s2610_s1, %s259_s16, %s3245_s18, %s3245_s18, %s2434_s7  }
  0x50   : > { %s2644_s17 = sand.u32 (!%p2597_p12), 1, %s2422_s22   ;;  %p3246_p6 = scmp.ne.s32.totalorder (!%p2597_p12), %s3239_s8, 0 }
  0x51   : > { %s2647_s12 = sshll.u32 (!%p2597_p12), %s2644_s17, 5  ;;  %s292_s19 = scalar_lea.sflag (!%p2597_p12), [#allocation3], %s2644_s17 }
  0x52   : > { %s2651_s29 = scalar_lea.vmem (!%p2597_p12), [#allocation2], %s2647_s12 }
  0x55   : > { %2401 = dma.done.wait (%p3246_p6), %s292_s19, 512  }
  0x56   : > { %2403 = vsyncadd (%p3246_p6), %s292_s19, 4294966784  ;;  %s301_s1 = scalar_lea.sflag [#allocation6], %s2644_s17  ;;  %s2659_s11 = scalar_lea.vmem [#allocation5], %s2647_s12 }
  0x57   : > { %2405 = dma.done.wait (%p3246_p6), %s301_s1, 512  }
  0x58   : > { %2407 = vsyncadd (%p3246_p6), %s301_s1, 4294966784  ;;  %p358_p13 = scmp.lt.s32.totalorder %s2503_s25, 1  ;;  %v2436_v0 = vmov 0.0   ;;  %vm2437_vm0 = vmmov 0   ;;  %vm419_vm1 = vcmask 1041409   ;;  %vm422_vm2 = vcmask 1042434  }
  0x59   : > { %2095 = vmatprep.subr.mxu0 %v2436_v0  ;;  %2100 = vmatprep.subr.mxu1 %v2436_v0  ;;  %vm425_vm3 = vcmask 1043459   ;;  %vm428_vm4 = vcmask 1044484   ;;  %vm431_vm5 = vcmask 1045509   ;;  %vm434_vm6 = vcmask 1046534   ;;  %v393_v1 = vld [vmem:[%s2651_s29] sm:$0x1] }
  0x5a   : > { %s2669_s7 = scalar_select %p358_p13, %s2503_s25, 1  ;;  %2097 = vmatprep.mubr.msk.f32.mxu0 %vm2437_vm0, %v2436_v0  ;;  %2102 = vmatprep.mubr.msk.f32.mxu1 %vm2437_vm0, %v2436_v0  ;;  %vm437_vm7 = vcmask 1047559   ;;  %v394_v2 = vld [vmem:[%s2651_s29 + $0x4] sm:$0x1]  ;;  %v395_v3 = vld [vmem:[%s2651_s29 + $0x8] sm:$0x1]  ;;  %v368_v53 = vlaneseq }
  0x5b   : > { %v396_v4 = vld [vmem:[%s2651_s29 + $0xc] sm:$0x1]  ;;  %v397_v5 = vld [vmem:[%s2651_s29 + $0x10] sm:$0x1]  ;;  %v398_v6 = vld [vmem:[%s2651_s29 + $0x14] sm:$0x1] }
  0x5c   : > { %s2074_s8 = sshll.u32 %s2669_s7, 5  ;;  %v399_v7 = vld [vmem:[%s2651_s29 + $0x18] sm:$0x1]  ;;  %v400_v8 = vld [vmem:[%s2651_s29 + $0x1c] sm:$0x1]  ;;  %v447_v9 = vrot.slane %v394_v2, 7 }
  0x5d   : > { %s2687_s16 = scalar_lea.vmem %s3226_s0, %s2074_s8  ;;  %v449_v10 = vrot.slane %v395_v3, 6  ;;  %v451_v11 = vrot.slane %v396_v4, 5  ;;  %v453_v12 = vrot.slane %v397_v5, 4  ;;  %v455_v13 = vrot.slane %v398_v6, 3  ;;  %v402_v2 = vld [vmem:[%s2659_s11 + $0x4] sm:$0x1]  ;;  %s367_s18 = scalar_lea.vmem %s3229_s3, %s2074_s8 }
  0x5e   : > { %vm461_vm8 = vcmask 261120   ;;  %v377_v14 = vld [vmem:[%s2687_s16] sm:$0x1]  ;;  %v448_v15 = vsel %vm419_vm1, %v447_v9, %v393_v1  ;;  %v457_v16 = vrot.slane %v399_v7, 2  ;;  %v459_v17 = vrot.slane %v400_v8, 1  ;;  %s2867_s13 = scalar_lea.vmem [#allocation8], %s2647_s12 }
  0x5f   : > { %v378_v18 = vld [vmem:[%s2687_s16 + $0x4] sm:$0x1]  ;;  %v379_v19 = vld [vmem:[%s2687_s16 + $0x8] sm:$0x1]  ;;  %v450_v20 = vsel %vm422_vm2, %v449_v10, %v448_v15  ;;  %v380_v21 = vld [vmem:[%s2687_s16 + $0xc] sm:$0x1] }
  0x60   : > { %v381_v22 = vld [vmem:[%s2687_s16 + $0x10] sm:$0x1]  ;;  %v382_v23 = vld [vmem:[%s2687_s16 + $0x14] sm:$0x1]  ;;  %v452_v24 = vsel %vm425_vm3, %v451_v11, %v450_v20  ;;  %v383_v25 = vld [vmem:[%s2687_s16 + $0x18] sm:$0x1] }
  0x61   : > { %v384_v26 = vld [vmem:[%s2687_s16 + $0x1c] sm:$0x1]  ;;  %v385_v27 = vmul.f32 0.17677669, %v377_v14  ;;  %v454_v28 = vsel %vm428_vm4, %v453_v12, %v452_v24  ;;  %v386_v29 = vmul.f32 0.17677669, %v378_v18 }
  0x62   : > { %v387_v30 = vmul.f32 0.17677669, %v379_v19  ;;  %v388_v31 = vmul.f32 0.17677669, %v380_v21  ;;  %v456_v32 = vsel %vm431_vm5, %v455_v13, %v454_v28  ;;  %v389_v33 = vmul.f32 0.17677669, %v381_v22 }
  0x63   : > { %v390_v34 = vmul.f32 0.17677669, %v382_v23  ;;  %v391_v35 = vmul.f32 0.17677669, %v383_v25  ;;  %v458_v36 = vsel %vm434_vm6, %v457_v16, %v456_v32  ;;  %v392_v37 = vmul.f32 0.17677669, %v384_v26 }
  0x64   : > { %v418_v38 = vrot.slane %v386_v29, 7  ;;  %v421_v39 = vrot.slane %v387_v30, 6  ;;  %v460_v40 = vsel %vm437_vm7, %v459_v17, %v458_v36  ;;  %v424_v41 = vrot.slane %v388_v31, 5  ;;  %v403_v3 = vld [vmem:[%s2659_s11 + $0x8] sm:$0x1]  ;;  %s2907_s15 = scalar_lea.vmem [#allocation7], %s2647_s12 }
  0x65   : > { %v427_v42 = vrot.slane %v389_v33, 4  ;;  %2096 = vmatpush3.xpose.msk.msra.mxu0 %vm461_vm8, %v460_v40  ;;  %v430_v44 = vrot.slane %v390_v34, 3  ;;  %v433_v46 = vrot.slane %v391_v35, 2  ;;  %v436_v48 = vrot.slane %v392_v37, 1  ;;  %v401_v5 = vld [vmem:[%s2659_s11] sm:$0x1] }
  0x66   : > { %v420_v43 = vsel %vm419_vm1, %v418_v38, %v385_v27  ;;  %2110 = vmatprep.subr.mxu0 %v2436_v0  ;;  %v2718_v54 = vshrl.u32 %v368_v53, 7  ;;  %v2720_v55 = vand.u32 127, %v368_v53  ;;  %vm537_vm10 = vcmask 64512   ;;  %v404_v6 = vld [vmem:[%s2659_s11 + $0xc] sm:$0x1]  ;;  %s3021_s19 = scalar_lea.vmem [#allocation10], %s2647_s12 }
  0x67   : > { %v423_v45 = vsel %vm422_vm2, %v421_v39, %v420_v43  ;;  %v577_v4 = vrot.slane %v402_v2, 7  ;;  %v579_v7 = vrot.slane %v403_v3, 6  ;;  %v405_v8 = vld [vmem:[%s2659_s11 + $0x10] sm:$0x1]  ;;  %v406_v9 = vld [vmem:[%s2659_s11 + $0x14] sm:$0x1] }
  0x68   : > { %v426_v47 = vsel %vm425_vm3, %v424_v41, %v423_v45  ;;  %vm372_vm9 = vcmp.gt.s32.totalorder %v2720_v55, %v2718_v54  ;;  %v407_v10 = vld [vmem:[%s2659_s11 + $0x18] sm:$0x1]  ;;  %v408_v12 = vld [vmem:[%s2659_s11 + $0x1c] sm:$0x1]  ;;  %v581_v14 = vrot.slane %v404_v6, 5  ;;  %v583_v15 = vrot.slane %v405_v8, 4 }
  0x69   : > { %v429_v49 = vsel %vm428_vm4, %v427_v42, %v426_v47  ;;  %v578_v11 = vsel %vm419_vm1, %v577_v4, %v401_v5  ;;  %v585_v16 = vrot.slane %v406_v9, 3  ;;  %v587_v17 = vrot.slane %v407_v10, 2  ;;  %v751_v24 = vld [vmem:[%s2651_s29 + $0x5] sm:$0x1]  ;;  %v752_v25 = vld [vmem:[%s2651_s29 + $0x9] sm:$0x1] }
  0x6a   : > { %v432_v50 = vsel %vm431_vm5, %v430_v44, %v429_v49  ;;  %v580_v13 = vsel %vm422_vm2, %v579_v7, %v578_v11  ;;  %v589_v19 = vrot.slane %v408_v12, 1  ;;  %v753_v26 = vld [vmem:[%s2651_s29 + $0xd] sm:$0x1]  ;;  %v2752_v27 = vld [vmem:[%s2651_s29 + $0x11] sm:$0x1]  ;;  %v798_v30 = vrot.slane %v751_v24, 7 }
  0x6b   : > { %v435_v51 = vsel %vm434_vm6, %v433_v46, %v432_v50  ;;  %v582_v18 = vsel %vm425_vm3, %v581_v14, %v580_v13  ;;  %v2755_v28 = vld [vmem:[%s2651_s29 + $0x15] sm:$0x1]  ;;  %v750_v29 = vld [vmem:[%s2651_s29 + $0x1] sm:$0x1]  ;;  %v735_v31 = vld [vmem:[%s2687_s16 + $0x5] sm:$0x1] }
  0x6c   : > { %v438_v52 = vsel %vm437_vm7, %v436_v48, %v435_v51  ;;  %v584_v20 = vsel %vm428_vm4, %v583_v15, %v582_v18  ;;  %v800_v32 = vrot.slane %v752_v25, 6  ;;  %v802_v33 = vrot.slane %v753_v26, 5  ;;  %v734_v34 = vld [vmem:[%s2687_s16 + $0x1] sm:$0x1]  ;;  %v736_v35 = vld [vmem:[%s2687_s16 + $0x9] sm:$0x1] }
  0x6d   : > { %2098 = vmatmul.mubr.msk.f32.vlgmr.msra.gmra.mrb[0].mxu0 %vm461_vm8, %v438_v52  ;;  %v586_v21 = vsel %vm431_vm5, %v585_v16, %v584_v20  ;;  %v2762_v36 = vld [vmem:[%s2651_s29 + $0x19] sm:$0x1]  ;;  %v804_v37 = vrot.slane %v2752_v27, 4  ;;  %v806_v38 = vrot.slane %v2755_v28, 3  ;;  %v737_v39 = vld [vmem:[%s2687_s16 + $0xd] sm:$0x1]  ;;  %v799_v47 = vsel %vm419_vm1, %v798_v30, %v750_v29 }
  0x6e   : > { %2112 = vmatprep.mubr.msk.f32.mxu0 %vm2437_vm0, %v2436_v0  ;;  %v588_v22 = vsel %vm434_vm6, %v587_v17, %v586_v21  ;;  %v2768_v40 = vld [vmem:[%s2651_s29 + $0x1d] sm:$0x1]  ;;  %v738_v41 = vld [vmem:[%s2687_s16 + $0x11] sm:$0x1]  ;;  %v739_v42 = vld [vmem:[%s2687_s16 + $0x15] sm:$0x1] }
  0x6f   : > { %v590_v23 = vsel %vm437_vm7, %v589_v19, %v588_v22  ;;  %v743_v43 = vmul.f32 0.17677669, %v735_v31  ;;  %v740_v44 = vld [vmem:[%s2687_s16 + $0x19] sm:$0x1]  ;;  %v741_v45 = vld [vmem:[%s2687_s16 + $0x1d] sm:$0x1] }
  0x70   : > { %2101 = vmatpush3.msra.mxu1 %v590_v23  ;;  %v744_v46 = vmul.f32 0.17677669, %v736_v35  ;;  %v742_v48 = vmul.f32 0.17677669, %v734_v34  ;;  %v2775_v49 = vmul.f32 0.17677669, %v737_v39 }
  0x71   : > { %2105 = vmatprep.subr.mxu1 %v2436_v0  ;;  %v1085_v50 = vld [vmem:[%s2687_s16 + $0x6] sm:$0x1]  ;;  %v2778_v51 = vmul.f32 0.17677669, %v738_v41  ;;  %v2780_v52 = vmul.f32 0.17677669, %v739_v42 }
  0x72   : > { %v1101_v53 = vld [vmem:[%s2651_s29 + $0x6] sm:$0x1]  ;;  %v1093_v2 = vmul.f32 0.17677669, %v1085_v50  ;;  %v780_v3 = vrot.slane %v2775_v49, 5  ;;  %vm723_vm11 = vcmask 253952  }
  0x73   : > { %v1148_v4 = vrot.slane %v1101_v53, 7  ;;  %v1084_v5 = vld [vmem:[%s2687_s16 + $0x2] sm:$0x1]  ;;  %v1086_v6 = vld [vmem:[%s2687_s16 + $0xa] sm:$0x1]  ;;  %v782_v7 = vrot.slane %v2778_v51, 4 }
  0x74   : > { %v784_v8 = vrot.slane %v2780_v52, 3  ;;  %v1100_v9 = vld [vmem:[%s2651_s29 + $0x2] sm:$0x1]  ;;  %v1435_v10 = vld [vmem:[%s2687_s16 + $0x7] sm:$0x1]  ;;  %v1126_v19 = vrot.slane %v1093_v2, 7 }
  0x75   : > { %v1103_v13 = vld [vmem:[%s2651_s29 + $0xe] sm:$0x1]  ;;  %v1451_v15 = vld [vmem:[%s2651_s29 + $0x7] sm:$0x1]  ;;  %v1092_v17 = vmul.f32 0.17677669, %v1084_v5  ;;  %v1149_v22 = vsel %vm419_vm1, %v1148_v4, %v1100_v9 }
  0x76   : > { %v1087_v14 = vld [vmem:[%s2687_s16 + $0xe] sm:$0x1]  ;;  %v1094_v18 = vmul.f32 0.17677669, %v1086_v6  ;;  %v1436_v23 = vld [vmem:[%s2687_s16 + $0xb] sm:$0x1] }
  0x77   : > { %v1443_v24 = vmul.f32 0.17677669, %v1435_v10  ;;  %v1104_v25 = vld [vmem:[%s2651_s29 + $0x12] sm:$0x1]  ;;  %v1152_v26 = vrot.slane %v1103_v13, 5  ;;  %v1498_v29 = vrot.slane %v1451_v15, 7  ;;  %v1127_v42 = vsel %vm419_vm1, %v1126_v19, %v1092_v17 }
  0x78   : > { %v1452_v27 = vld [vmem:[%s2651_s29 + $0xb] sm:$0x1]  ;;  %v1434_v30 = vld [vmem:[%s2687_s16 + $0x3] sm:$0x1]  ;;  %v1095_v34 = vmul.f32 0.17677669, %v1087_v14 }
  0x79   : > { %v1450_v35 = vld [vmem:[%s2651_s29 + $0x3] sm:$0x1]  ;;  %v1105_v50 = vld [vmem:[%s2651_s29 + $0x16] sm:$0x1]  ;;  %v1438_v2 = vld [vmem:[%s2687_s16 + $0x13] sm:$0x1] }
  0x7a   : > { %v1089_v51 = vld [vmem:[%s2687_s16 + $0x16] sm:$0x1]  ;;  %v1454_v6 = vld [vmem:[%s2651_s29 + $0x13] sm:$0x1]  ;;  %v1446_v19 = vmul.f32 0.17677669, %v1438_v2 }
  0x7b   : > { %s1789_s12 = sand.u32 1, %s2503_s25   ;;  %s1840_s1 = sshll.u32 %s3021_s19, 4  ;;  %s3074_s1 = int_to_ptr.vmem [resolvable:$true] %s1840_s1 }
  0x7c   : > { %s1824_s26 = sshll.u32 %s2867_s13, 4  ;;  %s3045_s14 = scalar_lea.sflag [#allocation9], %s1789_s12  ;;  %s3043_s26 = int_to_ptr.vmem [resolvable:$true] %s1824_s26 }
  0x7d   : > { %p3247_p12 = scmp.ne.s32.totalorder %s3240_s9, 0 }
 0x140   : > { %v532_v56 = vpop.f32.mrb[0].mxu0 }
 0x141   : > { %v536_v57 = vsel %vm372_vm9, -inf, %v532_v56  ;;  %v2099_v58 = vpop.f32.mrb[1].mxu0  ;;  %v808_v56 = vrot.slane %v2762_v36, 2 }
 0x142   : > { %v538_v59 = vsel %vm537_vm10, %v536_v57, -inf  ;;  %v2786_v58 = vmul.f32 0.17677669, %v741_v45  ;;  %v1444_v45 = vmul.f32 0.17677669, %v1436_v23  ;;  %v1504_v23 = vrot.slane %v1454_v6, 4 }
 0x143   : > { %539 = vmax.xlane.f32.xlu0 %v538_v59  ;;  %v776_v59 = vrot.slane %v743_v43, 7  ;;  %v1128_v43 = vrot.slane %v1094_v18, 6  ;;  %v1439_v18 = vld [vmem:[%s2687_s16 + $0x17] sm:$0x1] }
 0x144   : > { %v788_v21 = vrot.slane %v2786_v58, 1  ;;  %v1478_v9 = vrot.slane %v1444_v45, 6 }
 0x145   : > { %v777_v12 = vsel %vm419_vm1, %v776_v59, %v742_v48  ;;  %v1476_v48 = vrot.slane %v1443_v24, 7  ;;  %v1499_v59 = vsel %vm419_vm1, %v1498_v29, %v1450_v35  ;;  %v1129_v28 = vsel %vm422_vm2, %v1128_v43, %v1127_v42 }
 0x146   : > { %v1447_v35 = vmul.f32 0.17677669, %v1439_v18  ;;  %v1482_v42 = vrot.slane %v1446_v19, 4 }
 0x1d0   : > { %v540_v60 = vpop.xlane.xlu0 %539 }
 0x1d1   : > { %v541_v61 = vsub.f32 %v536_v57, %v540_v60  ;;  %v2784_v57 = vmul.f32 0.17677669, %v740_v44  ;;  %v801_v60 = vsel %vm422_vm2, %v800_v32, %v799_v47  ;;  %v1437_v44 = vld [vmem:[%s2687_s16 + $0xf] sm:$0x1]  ;;  %v1442_v47 = vmul.f32 0.17677669, %v1434_v30 }
 0x1d2   : > { %v803_v11 = vsel %vm425_vm3, %v802_v33, %v801_v60  ;;  %v1088_v33 = vld [vmem:[%s2687_s16 + $0x12] sm:$0x1]  ;;  %v1445_v4 = vmul.f32 0.17677669, %v1437_v44 }
 0x1d3   : > { %v542_v62 = vmul.f32 1.442695, %v541_v61  ;;  %v810_v61 = vrot.slane %v2768_v40, 1  ;;  %v786_v20 = vrot.slane %v2784_v57, 2  ;;  %v805_v31 = vsel %vm428_vm4, %v804_v37, %v803_v11  ;;  %v1106_v11 = vld [vmem:[%s2651_s29 + $0x1a] sm:$0x1] }
 0x1d4   : > { %v1500_v37 = vrot.slane %v1452_v27, 6  ;;  %v807_v49 = vsel %vm431_vm5, %v806_v38, %v805_v31  ;;  %v1096_v53 = vmul.f32 0.17677669, %v1088_v33  ;;  %v1477_v14 = vsel %vm419_vm1, %v1476_v48, %v1442_v47  ;;  %v1091_v27 = vld [vmem:[%s2687_s16 + $0x1e] sm:$0x1] }
 0x1d5   : > { %2208 = vpow2.f32 %v542_v62  ;;  %v778_v62 = vrot.slane %v744_v46, 6  ;;  %v1453_v46 = vld [vmem:[%s2651_s29 + $0xf] sm:$0x1]  ;;  %v809_v10 = vsel %vm434_vm6, %v808_v56, %v807_v49  ;;  %v1480_v24 = vrot.slane %v1445_v4, 5  ;;  %v1441_v48 = vld [vmem:[%s2687_s16 + $0x1f] sm:$0x1] }
 0x1d6   : > { %v1502_v38 = vrot.slane %v1453_v46, 5  ;;  %v1501_v13 = vsel %vm422_vm2, %v1500_v37, %v1499_v59  ;;  %v1132_v17 = vrot.slane %v1096_v53, 4  ;;  %v1479_v30 = vsel %vm422_vm2, %v1478_v9, %v1477_v14  ;;  %v1457_v53 = vld [vmem:[%s2651_s29 + $0x1f] sm:$0x1] }
 0x1d7   : > { %v779_v32 = vsel %vm422_vm2, %v778_v62, %v777_v12  ;;  %v1154_v62 = vrot.slane %v1104_v25, 4  ;;  %v1097_v12 = vmul.f32 0.17677669, %v1089_v51  ;;  %v811_v25 = vsel %vm437_vm7, %v810_v61, %v809_v10 }
 0x1d8   : > { %v781_v60 = vsel %vm425_vm3, %v780_v3, %v779_v32  ;;  %v1090_v3 = vld [vmem:[%s2687_s16 + $0x1a] sm:$0x1]  ;;  %v1503_v29 = vsel %vm425_vm3, %v1502_v38, %v1501_v13  ;;  %v1158_v32 = vrot.slane %v1106_v11, 2  ;;  %v1099_v45 = vmul.f32 0.17677669, %v1091_v27 }
 0x1d9   : > { %v783_v15 = vsel %vm428_vm4, %v782_v7, %v781_v60  ;;  %v1098_v7 = vmul.f32 0.17677669, %v1090_v3  ;;  %v1134_v33 = vrot.slane %v1097_v12, 3  ;;  %v1505_v52 = vsel %vm428_vm4, %v1504_v23, %v1503_v29 }
 0x1da   : > { %v785_v31 = vsel %vm431_vm5, %v784_v8, %v783_v15  ;;  %v1481_v8 = vsel %vm425_vm3, %v1480_v24, %v1479_v30  ;;  %v1484_v60 = vrot.slane %v1447_v35, 3  ;;  %v2438_v3 = vmov 1966171168  }
 0x1db   : > { %v787_v37 = vsel %vm434_vm6, %v786_v20, %v785_v31  ;;  %v1136_v47 = vrot.slane %v1098_v7, 2  ;;  %v1483_v57 = vsel %vm428_vm4, %v1482_v42, %v1481_v8  ;;  %v668_v12 = vunpack.c.l.s4 %v2438_v3  ;;  %v765_v3 = vld [vmem:[%s2659_s11 + $0x1d] sm:$0x1] }
 0x1dc   : > { %v789_v20 = vsel %vm437_vm7, %v788_v21, %v787_v37  ;;  %v1485_v38 = vsel %vm431_vm5, %v1484_v60, %v1483_v57  ;;  %v759_v57 = vld [vmem:[%s2659_s11 + $0x5] sm:$0x1] }
 0x1dd   : > { %v669_v13 = vunpack.c.0.s8 %v668_v12 }
 0x1df   : > { %v2728_v63 = vpop.eup %2208  ;;  %v2899_v14 = vsub.s32 %v669_v13, %v2718_v54 }
 0x1e0   : > { %v544_v1 = vsel %vm537_vm10, %v2728_v63, 0.0 }
 0x1e1   : > { %545 = vadd.xlane.f32.xlu0 %v544_v1  ;;  %v1102_v1 = vld [vmem:[%s2651_s29 + $0xa] sm:$0x1] }
 0x1e2   : > { %v1150_v16 = vrot.slane %v1102_v1, 6  ;;  %v1130_v1 = vrot.slane %v1095_v34, 5  ;;  %v1440_v34 = vld [vmem:[%s2687_s16 + $0x1b] sm:$0x1]  ;;  %s2300_s16 = scalar_lea.vmem %s3043_s26, 512 }
 0x1e3   : > { %v1448_v49 = vmul.f32 0.17677669, %v1440_v34  ;;  %p2301_p1 = scmp.ne.s32.totalorder %s3043_s26, %s2300_s16 }
 0x1e4   : > { %v1151_v41 = vsel %vm422_vm2, %v1150_v16, %v1149_v22  ;;  %v1156_v16 = vrot.slane %v1105_v50, 3  ;;  %v1131_v56 = vsel %vm425_vm3, %v1130_v1, %v1129_v28  ;;  %v1455_v22 = vld [vmem:[%s2651_s29 + $0x17] sm:$0x1]  ;;  %v1449_v1 = vmul.f32 0.17677669, %v1441_v48 }
 0x1e5   : > { %v1153_v5 = vsel %vm425_vm3, %v1152_v26, %v1151_v41  ;;  %v1107_v26 = vld [vmem:[%s2651_s29 + $0x1e] sm:$0x1]  ;;  %v1133_v61 = vsel %vm428_vm4, %v1132_v17, %v1131_v56  ;;  %v1506_v41 = vrot.slane %v1455_v22, 3  ;;  %v1486_v28 = vrot.slane %v1448_v49, 2  ;;  %p2302_p10 = pnand %p2301_p1, %p3247_p12 }
 0x1e6   : > { %v1155_v36 = vsel %vm428_vm4, %v1154_v62, %v1153_v5  ;;  %v1160_v44 = vrot.slane %v1107_v26, 1  ;;  %v1135_v51 = vsel %vm431_vm5, %v1134_v33, %v1133_v61  ;;  %v1138_v62 = vrot.slane %v1099_v45, 1 }
 0x1e7   : > { %v1157_v40 = vsel %vm431_vm5, %v1156_v16, %v1155_v36  ;;  %v1137_v4 = vsel %vm434_vm6, %v1136_v47, %v1135_v51  ;;  %v1510_v5 = vrot.slane %v1457_v53, 1  ;;  %v1488_v21 = vrot.slane %v1449_v1, 1  ;;  %v758_v1 = vld [vmem:[%s2659_s11 + $0x1] sm:$0x1]  ;;  %p2303_p5 = pneg %p2302_p10 }
 0x1e8   : > { %v1159_v50 = vsel %vm434_vm6, %v1158_v32, %v1157_v40  ;;  %v1139_v58 = vsel %vm437_vm7, %v1138_v62, %v1137_v4  ;;  %v1487_v10 = vsel %vm434_vm6, %v1486_v28, %v1485_v38  ;;  %v926_v62 = vrot.slane %v759_v57, 7  ;;  %v763_v38 = vld [vmem:[%s2659_s11 + $0x15] sm:$0x1]  ;;  %v1461_v57 = vld [vmem:[%s2659_s11 + $0xf] sm:$0x1] }
 0x1e9   : > { %v1161_v2 = vsel %vm437_vm7, %v1160_v44, %v1159_v50  ;;  %v1489_v11 = vsel %vm437_vm7, %v1488_v21, %v1487_v10 }
 0x1ea   : > { %v927_v28 = vsel %vm419_vm1, %v926_v62, %v758_v1  ;;  %v1113_v1 = vld [vmem:[%s2659_s11 + $0x16] sm:$0x1] }
 0x26e   : > { %v546_v39 = vpop.xlane.xlu0 %545 }
 0x26f   : > { %2210 = vrcp.f32 %v546_v39  ;;  %v1456_v39 = vld [vmem:[%s2651_s29 + $0x1b] sm:$0x1]  ;;  %s3033_s29 = sshll.u32 %s2503_s25, 9  ;;  %s2440_s25 = smov [#allocation8]  }
 0x270   : > { %v1508_v59 = vrot.slane %v1456_v39, 2  ;;  %s3040_s8 = scalar_lea.hbm %s3231_s5, %s3033_s29  ;;  %s2304_s20 = sshll.u32 %s2440_s25, 4  ;;  %s2305_s20 = int_to_ptr.vmem [resolvable:$false] %s2304_s20 }
 0x271   : > { %s2306_s28 = scalar_lea.vmem %s2305_s20, 1024  ;;  %p2307_p7 = scmp.lt.s32.totalorder %s3043_s26, %s2305_s20 }
 0x272   : > { %p2308_p9 = scmp.lt.s32.totalorder %s2306_s28, %s2300_s16 }
 0x274   : > { %p2309_p11 = por %p2308_p9, %p2307_p7 }
 0x276   : > { %p2310_p3 = pnand %p2309_p11, %p2303_p5 }
 0x279   : > { %v2211_v43 = vpop.eup %2210 }
 0x27a   : > { %v549_v46 = vmul.f32 %v2211_v43, %v2728_v63  ;;  %v1507_v63 = vsel %vm431_vm5, %v1506_v41, %v1505_v52 }
 0x27b   : > { %v1509_v6 = vsel %vm434_vm6, %v1508_v59, %v1507_v63 }
 0x27c   : > { %2103 = vmatmul.mubr.msk.f32.vlgmr.msra.gmra.mrb[0].mxu1 %vm537_vm10, %v549_v46  ;;  %732 = vst.msk [vmem:[%s2867_s13] sm:$0xff] %vm537_vm10, %v549_v46  ;;  %v1511_v9 = vsel %vm437_vm7, %v1510_v5, %v1509_v6  ;;  %v762_v5 = vld [vmem:[%s2659_s11 + $0x11] sm:$0x1] }
 0x27d   : > { %2106 = vmatpush3.xpose.msk.msra.mxu1 %vm461_vm8, %v811_v25  ;;  %2107 = vmatprep.mubr.msk.f32.mxu1 %vm2437_vm0, %v2436_v0  ;;  %v932_v21 = vrot.slane %v762_v5, 4 }
 0x27e   : > { %2115 = vmatprep.subr.mxu1 %v2436_v0 }
 0x280   : > { %2108 = vmatmul.mubr.msk.f32.vlgmr.msra.gmra.mrb[2].mxu1 %vm461_vm8, %v789_v20  ;;  %v760_v20 = vld [vmem:[%s2659_s11 + $0x9] sm:$0x1] }
 0x281   : > { %2116 = vmatpush3.xpose.msk.msra.mxu1 %vm461_vm8, %v1161_v2  ;;  %2117 = vmatprep.mubr.msk.f32.mxu1 %vm2437_vm0, %v2436_v0  ;;  %v761_v2 = vld [vmem:[%s2659_s11 + $0xd] sm:$0x1]  ;;  %v928_v4 = vrot.slane %v760_v20, 6 }
 0x282   : > { %2125 = vmatprep.subr.mxu1 %v2436_v0  ;;  %v930_v6 = vrot.slane %v761_v2, 5 }
 0x284   : > { %2118 = vmatmul.mubr.msk.f32.vlgmr.msra.gmra.mrb[4].mxu1 %vm461_vm8, %v1139_v58  ;;  %v929_v58 = vsel %vm422_vm2, %v928_v4, %v927_v28  ;;  %v1462_v28 = vld [vmem:[%s2659_s11 + $0x13] sm:$0x1] }
 0x285   : > { %2126 = vmatpush3.xpose.msk.msra.mxu1 %vm461_vm8, %v1511_v9  ;;  %2127 = vmatprep.mubr.msk.f32.mxu1 %vm2437_vm0, %v2436_v0  ;;  %v764_v9 = vld [vmem:[%s2659_s11 + $0x19] sm:$0x1]  ;;  %v931_v10 = vsel %vm425_vm3, %v930_v6, %v929_v58  ;;  %v1630_v6 = vrot.slane %v1461_v57, 5  ;;  %v1114_v58 = vld [vmem:[%s2659_s11 + $0x1a] sm:$0x1] }
 0x286   : > { %v933_v12 = vsel %vm428_vm4, %v932_v21, %v931_v10  ;;  %v936_v13 = vrot.slane %v764_v9, 2  ;;  %v1284_v21 = vrot.slane %v1113_v1, 3  ;;  %v1463_v10 = vld [vmem:[%s2659_s11 + $0x17] sm:$0x1] }
 0x288   : > { %2128 = vmatmul.mubr.msk.f32.vlgmr.msra.gmra.mrb[6].mxu1 %vm461_vm8, %v1489_v11  ;;  %v934_v11 = vrot.slane %v763_v38, 3 }
 0x34f   : > { %v661_v15 = vpop.f32.mrb[0].mxu1 }
 0x350   : > { %v666_v16 = vcombine.high %v661_v15, %v661_v15  ;;  %v673_v17 = vrot.slane %v661_v15, %v2899_v14  ;;  %v2104_v18 = vpop.f32.mrb[1].mxu1  ;;  %v935_v15 = vsel %vm431_vm5, %v934_v11, %v933_v12  ;;  %v1632_v11 = vrot.slane %v1462_v28, 4 }
 0x352   : > { %v680_v19 = vrot.slane %v666_v16, %v2899_v14  ;;  %v681_v36 = vcombine.high %v673_v17, %v673_v17  ;;  %v689_v56 = vrot.slane %v673_v17, %v2899_v14  ;;  %v938_v16 = vrot.slane %v765_v3, 1 }
 0x353   : > { %v882_v22 = vpop.f32.mrb[2].mxu1  ;;  %v937_v17 = vsel %vm434_vm6, %v936_v13, %v935_v15  ;;  %v1115_v13 = vld [vmem:[%s2659_s11 + $0x1e] sm:$0x1]  ;;  %v1286_v15 = vrot.slane %v1114_v58, 2 }
 0x354   : > { %v682_v23 = vcombine.high %v680_v19, %v680_v19  ;;  %v696_v24 = vrot.slane %v680_v19, %v2899_v14  ;;  %v703_v25 = vrot.slane %v681_v36, %v2899_v14  ;;  %v711_v26 = vcombine.high %v689_v56, %v689_v56  ;;  %724 = vst.msk [vmem:[%s2907_s15] sm:$0x1] %vm723_vm11, %v689_v56  ;;  %v2109_v27 = vpop.f32.mrb[3].mxu1  ;;  %v409_v36 = vld [vmem:[%s367_s18] sm:$0xff]  ;;  %v2043_v56 = vld [vmem:[%s367_s18 + $0x8] sm:$0xff] }
 0x355   : > { %v886_v7 = vsel %vm372_vm9, -inf, %v882_v22  ;;  %v939_v18 = vsel %vm437_vm7, %v938_v16, %v937_v17  ;;  %v2439_v19 = vmov 0   ;;  %v2049_v22 = vld [vmem:[%s367_s18 + $0x10] sm:$0xff]  ;;  %v1464_v17 = vld [vmem:[%s2659_s11 + $0x1b] sm:$0x1] }
 0x356   : > { %v710_v29 = vrot.slane %v682_v23, %v2899_v14  ;;  %v712_v30 = vcombine.high %v696_v24, %v696_v24  ;;  %v713_v31 = vcombine.high %v703_v25, %v703_v25  ;;  %725 = vst.msk [vmem:[%s2907_s15 + $0x4] sm:$0x1] %vm723_vm11, %v703_v25  ;;  %726 = vst.msk [vmem:[%s2907_s15 + $0x8] sm:$0x1] %vm723_vm11, %v711_v26  ;;  %v887_v32 = vsel %vm537_vm10, %v886_v7, -inf  ;;  %v2055_v23 = vld [vmem:[%s367_s18 + $0x18] sm:$0xff] }
 0x357   : > { %728 = vst.msk [vmem:[%s2907_s15 + $0x10] sm:$0x1] %vm723_vm11, %v696_v24  ;;  %888 = vmax.xlane.f32.xlu1 %v887_v32  ;;  %v1232_v33 = vpop.f32.mrb[4].mxu1  ;;  %2111 = vmatpush3.msra.mxu0 %v939_v18  ;;  %v1634_v18 = vrot.slane %v1463_v10, 3 }
 0x358   : > { %v714_v34 = vcombine.high %v710_v29, %v710_v29  ;;  %727 = vst.msk [vmem:[%s2907_s15 + $0xc] sm:$0x1] %vm723_vm11, %v713_v31  ;;  %729 = vst.msk [vmem:[%s2907_s15 + $0x14] sm:$0x1] %vm723_vm11, %v710_v29  ;;  %v1236_v35 = vsel %vm372_vm9, -inf, %v1232_v33  ;;  %v2119_v40 = vpop.f32.mrb[5].mxu1  ;;  %2120 = vmatprep.subr.mxu0 %v2436_v0  ;;  %2207 = vset.pattern.permute.xlu1 %v2439_v19 }
 0x359   : > { %730 = vst.msk [vmem:[%s2907_s15 + $0x18] sm:$0x1] %vm723_vm11, %v712_v30  ;;  %v1237_v61 = vsel %vm537_vm10, %v1236_v35, -inf  ;;  %2206 = vset.pattern.permute.xlu0 %v2439_v19 }
 0x35a   : > { %731 = vst.msk [vmem:[%s2907_s15 + $0x1c] sm:$0x1] %vm723_vm11, %v714_v34 }
 0x35b   : > { %1238 = vmax.xlane.f32.xlu1 %v1237_v61  ;;  %v1582_v39 = vpop.f32.mrb[6].mxu1 }
 0x35c   : > { %v1586_v41 = vsel %vm372_vm9, -inf, %v1582_v39  ;;  %v2129_v42 = vpop.f32.mrb[7].mxu1 }
 0x35d   : > { %v1587_v43 = vsel %vm537_vm10, %v1586_v41, -inf  ;;  %v1109_v42 = vld [vmem:[%s2659_s11 + $0x6] sm:$0x1] }
 0x35e   : > { %1588 = vmax.xlane.f32.xlu0 %v1587_v43  ;;  %v1110_v43 = vld [vmem:[%s2659_s11 + $0xa] sm:$0x1] }
 0x3e4   : > { %v889_v44 = vpop.xlane.xlu1 %888 }
 0x3e5   : > { %v890_v45 = vsub.f32 %v886_v7, %v889_v44  ;;  %v1276_v44 = vrot.slane %v1109_v42, 7 }
 0x3e7   : > { %v891_v52 = vmul.f32 1.442695, %v890_v45  ;;  %v1108_v45 = vld [vmem:[%s2659_s11 + $0x2] sm:$0x1] }
 0x3e8   : > { %v1239_v8 = vpop.xlane.xlu1 %1238 }
 0x3e9   : > { %2212 = vpow2.f32 %v891_v52  ;;  %v1240_v46 = vsub.f32 %v1236_v35, %v1239_v8  ;;  %v1459_v52 = vld [vmem:[%s2659_s11 + $0x7] sm:$0x1]  ;;  %v1111_v8 = vld [vmem:[%s2659_s11 + $0xe] sm:$0x1] }
 0x3eb   : > { %v1241_v37 = vmul.f32 1.442695, %v1240_v46  ;;  %v1589_v47 = vpop.xlane.xlu0 %1588  ;;  %v1278_v46 = vrot.slane %v1110_v43, 6 }
 0x3ec   : > { %v1590_v48 = vsub.f32 %v1586_v41, %v1589_v47  ;;  %v1460_v47 = vld [vmem:[%s2659_s11 + $0xb] sm:$0x1] }
 0x3ed   : > { %2214 = vpow2.f32 %v1241_v37  ;;  %v1277_v37 = vsel %vm419_vm1, %v1276_v44, %v1108_v45  ;;  %v1628_v20 = vrot.slane %v1460_v47, 6 }
 0x3ee   : > { %v1591_v49 = vmul.f32 1.442695, %v1590_v48  ;;  %v1626_v48 = vrot.slane %v1459_v52, 7 }
 0x3f0   : > { %2216 = vpow2.f32 %v1591_v49  ;;  %v1458_v49 = vld [vmem:[%s2659_s11 + $0x3] sm:$0x1] }
 0x3f1   : > { %2218 = vrcp.f32 %v409_v36  ;;  %v1627_v62 = vsel %vm419_vm1, %v1626_v48, %v1458_v49 }
 0x3f2   : > { %2220 = vrcp.f32 %v2043_v56  ;;  %v1629_v38 = vsel %vm422_vm2, %v1628_v20, %v1627_v62  ;;  %v1288_v56 = vrot.slane %v1115_v13, 1 }
 0x3f3   : > { %v2938_v50 = vpop.eup %2212  ;;  %2222 = vrcp.f32 %v2049_v22  ;;  %v1631_v12 = vsel %vm425_vm3, %v1630_v6, %v1629_v38 }
 0x3f4   : > { %v893_v51 = vsel %vm537_vm10, %v2938_v50, 0.0  ;;  %2224 = vrcp.f32 %v2055_v23  ;;  %v1633_v36 = vsel %vm428_vm4, %v1632_v11, %v1631_v12  ;;  %v1465_v23 = vld [vmem:[%s2659_s11 + $0x1f] sm:$0x1] }
 0x3f5   : > { %894 = vadd.xlane.f32.xlu1 %v893_v51  ;;  %v1112_v51 = vld [vmem:[%s2659_s11 + $0x12] sm:$0x1] }
 0x3f6   : > { %v1282_v2 = vrot.slane %v1112_v51, 4 }
 0x3f7   : > { %v2942_v53 = vpop.eup %2214 }
 0x3f8   : > { %v1243_v59 = vsel %vm537_vm10, %v2942_v53, 0.0 }
 0x3f9   : > { %1244 = vadd.xlane.f32.xlu0 %v1243_v59  ;;  %v1280_v59 = vrot.slane %v1111_v8, 5 }
 0x3fa   : > { %v2946_v60 = vpop.eup %2216 }
 0x3fb   : > { %v1593_v63 = vsel %vm537_vm10, %v2946_v60, 0.0  ;;  %v2219_v24 = vpop.eup %2218 }
 0x3fc   : > { %1594 = vadd.xlane.f32.xlu1 %v1593_v63  ;;  %v2221_v25 = vpop.eup %2220  ;;  %v552_v26 = vmul.f32 0.3989423, %v2219_v24  ;;  %v553_v27 = vmul.f32 0.5, %v2219_v24  ;;  %v1279_v63 = vsel %vm422_vm2, %v1278_v46, %v1277_v37 }
 0x3fd   : > { %v902_v7 = vmul.f32 0.5, %v2221_v25  ;;  %v2223_v30 = vpop.eup %2222  ;;  %v901_v32 = vmul.f32 0.3989423, %v2221_v25  ;;  %v1281_v5 = vsel %vm425_vm3, %v1280_v59, %v1279_v63 }
 0x3fe   : > { %v554_v29 = vmul.f32 %v2219_v24, %v553_v27  ;;  %v1252_v33 = vmul.f32 0.5, %v2223_v30  ;;  %v2225_v35 = vpop.eup %2224  ;;  %v1251_v40 = vmul.f32 0.3989423, %v2223_v30  ;;  %v1283_v9 = vsel %vm428_vm4, %v1282_v2, %v1281_v5 }
 0x3ff   : > { %v903_v31 = vmul.f32 %v2221_v25, %v902_v7  ;;  %v1602_v61 = vmul.f32 0.5, %v2225_v35  ;;  %v1601_v41 = vmul.f32 0.3989423, %v2225_v35  ;;  %v1285_v16 = vsel %vm431_vm5, %v1284_v21, %v1283_v9 }
 0x400   : > { %v1253_v34 = vmul.f32 %v2223_v30, %v1252_v33  ;;  %v1287_v22 = vsel %vm434_vm6, %v1286_v15, %v1285_v16  ;;  %v1636_v24 = vrot.slane %v1464_v17, 2  ;;  %v1635_v25 = vsel %vm431_vm5, %v1634_v18, %v1633_v36 }
 0x401   : > { %v1603_v39 = vmul.f32 %v2225_v35, %v1602_v61  ;;  %v1289_v7 = vsel %vm437_vm7, %v1288_v56, %v1287_v22 }
 0x402   : > { %v1637_v30 = vsel %vm434_vm6, %v1636_v24, %v1635_v25 }
 0x40d   : > { %565 = vperm.xlu1 %2207, %v552_v26  }
 0x40f   : > { %557 = vperm.xlu0 %2206, %v554_v29   ;;  %v1638_v29 = vrot.slane %v1465_v23, 1 }
 0x411   : > { %906 = vperm.xlu1 %2207, %v903_v31  }
 0x415   : > { %914 = vperm.xlu1 %2207, %v901_v32  }
 0x419   : > { %1256 = vperm.xlu1 %2207, %v1253_v34  }
 0x41d   : > { %1264 = vperm.xlu1 %2207, %v1251_v40  }
 0x421   : > { %1606 = vperm.xlu1 %2207, %v1603_v39  }
 0x425   : > { %1614 = vperm.xlu1 %2207, %v1601_v41  }
 0x482   : > { %v895_v4 = vpop.xlane.xlu1 %894 }
 0x483   : > { %2226 = vrcp.f32 %v895_v4 }
 0x486   : > { %v1245_v3 = vpop.xlane.xlu0 %1244 }
 0x487   : > { %2228 = vrcp.f32 %v1245_v3 }
 0x489   : > { %v1595_v19 = vpop.xlane.xlu1 %1594 }
 0x48a   : > { %2230 = vrcp.f32 %v1595_v19 }
 0x48d   : > { %v2227_v26 = vpop.eup %2226  ;;  %v566_v39 = vpop.permute.xlu1 %565 }
 0x48e   : > { %v898_v27 = vmul.f32 %v2227_v26, %v2938_v50  ;;  %v1639_v50 = vsel %vm437_vm7, %v1638_v29, %v1637_v30  ;;  %v558_v41 = vpop.permute.xlu0 %557 }
 0x490   : > { %2047 = vst.msk [vmem:[%s2867_s13 + $0x8] sm:$0xff] %vm537_vm10, %v898_v27  ;;  %2113 = vmatmul.mubr.msk.f32.vlgmr.msra.gmra.mrb[2].mxu0 %vm537_vm10, %v898_v27 }
 0x491   : > { %v2229_v31 = vpop.eup %2228  ;;  %2121 = vmatpush3.msra.mxu0 %v1289_v7  ;;  %2122 = vmatprep.mubr.msk.f32.mxu0 %vm2437_vm0, %v2436_v0  ;;  %v907_v43 = vpop.permute.xlu1 %906 }
 0x492   : > { %v1248_v32 = vmul.f32 %v2229_v31, %v2942_v53  ;;  %2130 = vmatprep.subr.mxu0 %v2436_v0  ;;  %v373_v53 = vsub.s32 %v2718_v54, %v2720_v55 }
 0x494   : > { %v2231_v33 = vpop.eup %2230  ;;  %2053 = vst.msk [vmem:[%s2867_s13 + $0x10] sm:$0xff] %vm537_vm10, %v1248_v32  ;;  %2123 = vmatmul.mubr.msk.f32.vlgmr.msra.gmra.mrb[4].mxu0 %vm537_vm10, %v1248_v32  ;;  %v374_v35 = vcvt.s32.f32 %v373_v53 }
 0x495   : > { %v1598_v34 = vmul.f32 %v2231_v33, %v2946_v60  ;;  %2131 = vmatpush3.msra.mxu0 %v1639_v50  ;;  %2132 = vmatprep.mubr.msk.f32.mxu0 %vm2437_vm0, %v2436_v0  ;;  %v915_v0 = vpop.permute.xlu1 %914 }
 0x496   : > { %v375_v40 = vmul.f32 %v374_v35, %v374_v35 }
 0x497   : > { %2059 = vst.msk [vmem:[%s2867_s13 + $0x18] sm:$0xff] %vm537_vm10, %v1598_v34 }
 0x498   : > { %2133 = vmatmul.mubr.msk.f32.vlgmr.msra.gmra.mrb[6].mxu0 %vm537_vm10, %v1598_v34  ;;  %v376_v61 = vsub.f32 0.0, %v375_v40 }
 0x499   : > { %v1257_v52 = vpop.permute.xlu1 %1256 }
 0x49a   : > { %v560_v42 = vmul.f32 %v558_v41, %v376_v61  ;;  %v909_v44 = vmul.f32 %v907_v43, %v376_v61  ;;  %v1259_v8 = vmul.f32 %v1257_v52, %v376_v61 }
 0x49c   : > { %v561_v60 = vmul.f32 1.442695, %v560_v42  ;;  %v910_v45 = vmul.f32 1.442695, %v909_v44  ;;  %v1260_v46 = vmul.f32 1.442695, %v1259_v8 }
 0x49d   : > { %v1265_v37 = vpop.permute.xlu1 %1264 }
 0x49e   : > { %2232 = vpow2.f32 %v561_v60 }
 0x49f   : > { %2234 = vpow2.f32 %v910_v45 }
 0x4a0   : > { %2236 = vpow2.f32 %v1260_v46 }
 0x4a1   : > { %v1607_v49 = vpop.permute.xlu1 %1606 }
 0x4a2   : > { %v1609_v51 = vmul.f32 %v1607_v49, %v376_v61 }
 0x4a4   : > { %v1610_v59 = vmul.f32 1.442695, %v1609_v51 }
 0x4a5   : > { %v1615_v20 = vpop.permute.xlu1 %1614 }
 0x4a6   : > { %2238 = vpow2.f32 %v1610_v59 }
 0x4a8   : > { %v2233_v47 = vpop.eup %2232 }
 0x4a9   : > { %v568_v54 = vmul.f32 %v2233_v47, %v566_v39  ;;  %v2235_v55 = vpop.eup %2234 }
 0x4aa   : > { %v917_v48 = vmul.f32 %v2235_v55, %v915_v0  ;;  %v2237_v63 = vpop.eup %2236 }
 0x4ab   : > { %733 = vst.msk [vmem:[%s3021_s19] sm:$0xff] %vm537_vm10, %v568_v54  ;;  %v1267_v57 = vmul.f32 %v2237_v63, %v1265_v37 }
 0x4ac   : > { %2048 = vst.msk [vmem:[%s3021_s19 + $0x8] sm:$0xff] %vm537_vm10, %v917_v48 }
 0x4ad   : > { %2054 = vst.msk [vmem:[%s3021_s19 + $0x10] sm:$0xff] %vm537_vm10, %v1267_v57 }
 0x4b0   : > { %v2239_v62 = vpop.eup %2238 }
 0x4b1   : > { %v1617_v1 = vmul.f32 %v2239_v62, %v1615_v20 }
 0x4b3   : > { %2060 = vst.msk [vmem:[%s3021_s19 + $0x18] sm:$0xff] %vm537_vm10, %v1617_v1 }
 0x4b4   : > { %2313 = shalt.err (!%p2310_p3)
}
 0x4b5   : > { %s2314_s13 = scalar_lea.hbm %s3040_s8, 512  ;;  %s2318_s11 = scalar_lea.hbm %s3231_s5, 1024 }
 0x4b6   : > { %p2315_p8 = scmp.ne.s32.totalorder %s3040_s8, %s2314_s13  ;;  %p2319_p4 = scmp.lt.u32.totalorder %s3040_s8, %s3231_s5 }
 0x4b7   : > { %p2320_p6 = scmp.lt.u32.totalorder %s2318_s11, %s2314_s13  ;;  %p2322_p1 = scmp.lt.u32.totalorder %s2314_s13, %s3040_s8 }
 0x4b8   : > { %p2316_p0 = pnand %p2315_p8, %p3247_p12 }
 0x4b9   : > { %p2321_p13 = por %p2320_p6, %p2319_p4 }
 0x4ba   : > { %p2317_p2 = pneg %p2316_p0 }
 0x4bb   : > { %p2323_p10 = por %p2322_p1, %p2321_p13 }
 0x4bd   : > { %p2324_p5 = pnand %p2323_p10, %p2317_p2 }
 0x4bf   : > { %2327 = shalt.err (!%p2324_p5)
}
 0x4c0   : > { %s2441_s16 = smov 128   ;;  %s2442_s20 = smov 8  }
 0x4c1   : > { %2140 = dma.vmem_to_hbm [thread:$0]  (%p3247_p12), %s3043_s26, 512, %s3040_s8, %s3045_s14, %s2441_s16, %s2441_s16, %s2442_s20  }
 0x4c2   : > { %s3080_s18 = scalar_lea.hbm %s3232_s6, %s3033_s29  ;;  %s2328_s12 = scalar_lea.vmem %s3074_s1, 512 }
 0x4c3   : > { %p2329_p7 = scmp.ne.s32.totalorder %s3074_s1, %s2328_s12  ;;  %s2443_s11 = smov [#allocation10]  }
 0x4c4   : > { %s2332_s7 = sshll.u32 %s2443_s11, 4  ;;  %s2333_s7 = int_to_ptr.vmem [resolvable:$false] %s2332_s7 }
 0x4c5   : > { %p2330_p9 = pnand %p2329_p7, %p3247_p12  ;;  %s2334_s8 = scalar_lea.vmem %s2333_s7, 1024 }
 0x4c6   : > { %p2335_p3 = scmp.lt.s32.totalorder %s3074_s1, %s2333_s7  ;;  %p2336_p8 = scmp.lt.s32.totalorder %s2334_s8, %s2328_s12 }
 0x4c7   : > { %p2331_p11 = pneg %p2330_p9 }
 0x4c8   : > { %p2337_p0 = por %p2336_p8, %p2335_p3 }
 0x4ca   : > { %p2338_p2 = pnand %p2337_p0, %p2331_p11 }
 0x4cc   : > { %2341 = shalt.err (!%p2338_p2)
}
 0x4cd   : > { %s2342_s19 = scalar_lea.hbm %s3080_s18, 512  ;;  %s2346_s28 = scalar_lea.hbm %s3232_s6, 1024 }
 0x4ce   : > { %p2343_p4 = scmp.ne.s32.totalorder %s3080_s18, %s2342_s19  ;;  %p2347_p1 = scmp.lt.u32.totalorder %s3080_s18, %s3232_s6 }
 0x4cf   : > { %p2348_p10 = scmp.lt.u32.totalorder %s2346_s28, %s2342_s19  ;;  %p2350_p7 = scmp.lt.u32.totalorder %s2342_s19, %s3080_s18 }
 0x4d0   : > { %p2344_p6 = pnand %p2343_p4, %p3247_p12 }
 0x4d1   : > { %p2349_p5 = por %p2348_p10, %p2347_p1 }
 0x4d2   : > { %p2345_p13 = pneg %p2344_p6 }
 0x4d3   : > { %p2351_p9 = por %p2350_p7, %p2349_p5 }
 0x4d5   : > { %p2352_p11 = pnand %p2351_p9, %p2345_p13 }
 0x4d7   : > { %2355 = shalt.err (!%p2352_p11)
}
 0x4d8   : > { %2141 = dma.vmem_to_hbm [thread:$0]  (%p3247_p12), %s3074_s1, 512, %s3080_s18, %s3045_s14, %s2441_s16, %s2441_s16, %s2442_s20  }
 0x4d9   : > { %s1808_s1 = sshll.u32 %s2907_s15, 4  ;;  %s3168_s20 = scalar_lea.hbm %s3230_s4, %s3033_s29  ;;  %s3172_s1 = int_to_ptr.vmem [resolvable:$true] %s1808_s1 }
 0x4da   : > { %s1785_s18 = scalar_lea.sflag [#allocation4], %s2644_s17  ;;  %s2356_s12 = scalar_lea.vmem %s3172_s1, 512 }
 0x4db   : > { %p2357_p3 = scmp.ne.s32.totalorder %s3172_s1, %s2356_s12  ;;  %s2444_s29 = smov [#allocation7]  }
 0x4dc   : > { %s2360_s7 = sshll.u32 %s2444_s29, 4  ;;  %s2361_s7 = int_to_ptr.vmem [resolvable:$false] %s2360_s7 }
 0x4dd   : > { %p2358_p8 = pnand %p2357_p3, %p3247_p12  ;;  %s2362_s8 = scalar_lea.vmem %s2361_s7, 1024 }
 0x4de   : > { %p2363_p2 = scmp.lt.s32.totalorder %s3172_s1, %s2361_s7  ;;  %p2364_p4 = scmp.lt.s32.totalorder %s2362_s8, %s2356_s12 }
 0x4df   : > { %p2359_p0 = pneg %p2358_p8 }
 0x4e0   : > { %p2365_p6 = por %p2364_p4, %p2363_p2 }
 0x4e2   : > { %p2366_p13 = pnand %p2365_p6, %p2359_p0 }
 0x563   : > { %v1010_v2 = vpop.f32.mrb[2].mxu0 }
 0x564   : > { %v1015_v4 = vcombine.high %v1010_v2, %v1010_v2  ;;  %v1022_v5 = vrot.slane %v1010_v2, %v2899_v14  ;;  %v2114_v28 = vpop.f32.mrb[3].mxu0 }
 0x566   : > { %v1029_v6 = vrot.slane %v1015_v4, %v2899_v14  ;;  %v1030_v38 = vcombine.high %v1022_v5, %v1022_v5  ;;  %v1038_v58 = vrot.slane %v1022_v5, %v2899_v14 }
 0x567   : > { %v1360_v21 = vpop.f32.mrb[4].mxu0 }
 0x568   : > { %v1031_v9 = vcombine.high %v1029_v6, %v1029_v6  ;;  %v1045_v10 = vrot.slane %v1029_v6, %v2899_v14  ;;  %v1052_v11 = vrot.slane %v1030_v38, %v2899_v14  ;;  %v1060_v3 = vcombine.high %v1038_v58, %v1038_v58  ;;  %1072 = vst.msk [vmem:[%s2907_s15 + $0x1] sm:$0x1] %vm723_vm11, %v1038_v58  ;;  %v2124_v12 = vpop.f32.mrb[5].mxu0 }
 0x569   : > { %v1365_v13 = vcombine.high %v1360_v21, %v1360_v21  ;;  %v1372_v15 = vrot.slane %v1360_v21, %v2899_v14 }
 0x56a   : > { %v1059_v16 = vrot.slane %v1031_v9, %v2899_v14  ;;  %v1061_v17 = vcombine.high %v1045_v10, %v1045_v10  ;;  %v1062_v18 = vcombine.high %v1052_v11, %v1052_v11  ;;  %1073 = vst.msk [vmem:[%s2907_s15 + $0x5] sm:$0x1] %vm723_vm11, %v1052_v11  ;;  %1074 = vst.msk [vmem:[%s2907_s15 + $0x9] sm:$0x1] %vm723_vm11, %v1060_v3 }
 0x56b   : > { %1076 = vst.msk [vmem:[%s2907_s15 + $0x11] sm:$0x1] %vm723_vm11, %v1045_v10  ;;  %v1379_v19 = vrot.slane %v1365_v13, %v2899_v14  ;;  %v1380_v36 = vcombine.high %v1372_v15, %v1372_v15  ;;  %v1388_v56 = vrot.slane %v1372_v15, %v2899_v14  ;;  %v1710_v22 = vpop.f32.mrb[6].mxu0 }
 0x56c   : > { %v1063_v23 = vcombine.high %v1059_v16, %v1059_v16  ;;  %1075 = vst.msk [vmem:[%s2907_s15 + $0xd] sm:$0x1] %vm723_vm11, %v1062_v18  ;;  %1077 = vst.msk [vmem:[%s2907_s15 + $0x15] sm:$0x1] %vm723_vm11, %v1059_v16  ;;  %v1715_v24 = vcombine.high %v1710_v22, %v1710_v22  ;;  %v1722_v25 = vrot.slane %v1710_v22, %v2899_v14  ;;  %v2134_v26 = vpop.f32.mrb[7].mxu0 }
 0x56d   : > { %1078 = vst.msk [vmem:[%s2907_s15 + $0x19] sm:$0x1] %vm723_vm11, %v1061_v17  ;;  %v1381_v27 = vcombine.high %v1379_v19, %v1379_v19  ;;  %v1395_v7 = vrot.slane %v1379_v19, %v2899_v14  ;;  %v1402_v29 = vrot.slane %v1380_v36, %v2899_v14  ;;  %v1410_v30 = vcombine.high %v1388_v56, %v1388_v56 }
 0x56e   : > { %1422 = vst.msk [vmem:[%s2907_s15 + $0x2] sm:$0x1] %vm723_vm11, %v1388_v56  ;;  %1079 = vst.msk [vmem:[%s2907_s15 + $0x1d] sm:$0x1] %vm723_vm11, %v1063_v23  ;;  %v1729_v31 = vrot.slane %v1715_v24, %v2899_v14  ;;  %v1730_v32 = vcombine.high %v1722_v25, %v1722_v25  ;;  %v1738_v50 = vrot.slane %v1722_v25, %v2899_v14 }
 0x56f   : > { %v1409_v33 = vrot.slane %v1381_v27, %v2899_v14  ;;  %v1411_v34 = vcombine.high %v1395_v7, %v1395_v7  ;;  %v1412_v53 = vcombine.high %v1402_v29, %v1402_v29  ;;  %1423 = vst.msk [vmem:[%s2907_s15 + $0x6] sm:$0x1] %vm723_vm11, %v1402_v29  ;;  %1424 = vst.msk [vmem:[%s2907_s15 + $0xa] sm:$0x1] %vm723_vm11, %v1410_v30 }
 0x570   : > { %1426 = vst.msk [vmem:[%s2907_s15 + $0x12] sm:$0x1] %vm723_vm11, %v1395_v7  ;;  %v1731_v35 = vcombine.high %v1729_v31, %v1729_v31  ;;  %v1745_v40 = vrot.slane %v1729_v31, %v2899_v14  ;;  %v1752_v61 = vrot.slane %v1730_v32, %v2899_v14  ;;  %v1760_v39 = vcombine.high %v1738_v50, %v1738_v50 }
 0x571   : > { %1772 = vst.msk [vmem:[%s2907_s15 + $0x3] sm:$0x1] %vm723_vm11, %v1738_v50  ;;  %v1413_v41 = vcombine.high %v1409_v33, %v1409_v33  ;;  %1425 = vst.msk [vmem:[%s2907_s15 + $0xe] sm:$0x1] %vm723_vm11, %v1412_v53 }
 0x572   : > { %1427 = vst.msk [vmem:[%s2907_s15 + $0x16] sm:$0x1] %vm723_vm11, %v1409_v33  ;;  %1428 = vst.msk [vmem:[%s2907_s15 + $0x1a] sm:$0x1] %vm723_vm11, %v1411_v34  ;;  %v1759_v42 = vrot.slane %v1731_v35, %v2899_v14  ;;  %v1761_v43 = vcombine.high %v1745_v40, %v1745_v40  ;;  %v1762_v44 = vcombine.high %v1752_v61, %v1752_v61 }
 0x573   : > { %1773 = vst.msk [vmem:[%s2907_s15 + $0x7] sm:$0x1] %vm723_vm11, %v1752_v61  ;;  %1774 = vst.msk [vmem:[%s2907_s15 + $0xb] sm:$0x1] %vm723_vm11, %v1760_v39 }
 0x574   : > { %1776 = vst.msk [vmem:[%s2907_s15 + $0x13] sm:$0x1] %vm723_vm11, %v1745_v40  ;;  %1429 = vst.msk [vmem:[%s2907_s15 + $0x1e] sm:$0x1] %vm723_vm11, %v1413_v41  ;;  %v1763_v14 = vcombine.high %v1759_v42, %v1759_v42 }
 0x575   : > { %1775 = vst.msk [vmem:[%s2907_s15 + $0xf] sm:$0x1] %vm723_vm11, %v1762_v44  ;;  %1777 = vst.msk [vmem:[%s2907_s15 + $0x17] sm:$0x1] %vm723_vm11, %v1759_v42 }
 0x576   : > { %1778 = vst.msk [vmem:[%s2907_s15 + $0x1b] sm:$0x1] %vm723_vm11, %v1761_v43  ;;  %1779 = vst.msk [vmem:[%s2907_s15 + $0x1f] sm:$0x1] %vm723_vm11, %v1763_v14 }
 0x577   : > { %2369 = shalt.err (!%p2366_p13)
}
 0x578   : > { %s2370_s15 = scalar_lea.hbm %s3168_s20, 512  ;;  %s2374_s25 = scalar_lea.hbm %s3230_s4, 1024 }
 0x579   : > { %p2371_p1 = scmp.ne.s32.totalorder %s3168_s20, %s2370_s15  ;;  %p2375_p7 = scmp.lt.u32.totalorder %s3168_s20, %s3230_s4 }
 0x57a   : > { %p2376_p9 = scmp.lt.u32.totalorder %s2374_s25, %s2370_s15  ;;  %p2378_p3 = scmp.lt.u32.totalorder %s2370_s15, %s3168_s20 }
 0x57b   : > { %p2372_p10 = pnand %p2371_p1, %p3247_p12 }
 0x57c   : > { %p2377_p11 = por %p2376_p9, %p2375_p7 }
 0x57d   : > { %p2373_p5 = pneg %p2372_p10 }
 0x57e   : > { %p2379_p8 = por %p2378_p3, %p2377_p11 }
 0x580   : > { %p2380_p0 = pnand %p2379_p8, %p2373_p5 }
 0x582   : > { %2383 = shalt.err (!%p2380_p0)
}
 0x583   : > { %s2445_s11 = smov 64   ;;  %s2446_s14 = smov 4  }
 0x584   : > { %2139 = dma.vmem_to_hbm [thread:$0]  (%p3247_p12), %s3172_s1, 512, %s3168_s20, %s1785_s18, %s2445_s11, %s2445_s11, %s2446_s14  }
 0x585 PF: > { %s1855_s16 = sand.u32 1, %s2418_s21   ;;  %p3248_p2 = scmp.ne.s32.totalorder %s3241_s10, 0 }
 0x586   : > { %p3249_p4 = scmp.ge.s32.totalorder %s2430_s24, 2  ;;  %s1856_s12 = scalar_lea.sflag [#allocation4], %s1855_s16 }
 0x588   : > { %p2153_p6 = pnand %p3249_p4, %p3248_p2 }
 0x58a   : > { %2409 = dma.done.wait (!%p2153_p6), %s1856_s12, 512  }
 0x58b   : > { %2411 = vsyncadd (!%p2153_p6), %s1856_s12, 4294966784  ;;  %s3250_s29 = sadd.s32 4294967294, %s2430_s24  }
 0x58c   : > { %s1864_s7 = sand.u32 1, %s3250_s29  }
 0x58d   : > { %s1865_s8 = scalar_lea.sflag [#allocation9], %s1864_s7 }
 0x58e   : > { %2413 = dma.done.wait (!%p2153_p6), %s1865_s8, 1024  }
 0x58f   : > { %2415 = vsyncadd (!%p2153_p6), %s1865_s8, 4294966272  ;;  %p26_p12 = scmp.ge.s32.totalorder %s2507_s27, 4   ;;  %s3251_s21 = smov %s2422_s22 }
 0x590   : > { %s3252_s22 = smov %s2426_s23  ;;  %s3253_s23 = smov %s2519_s30 }
 0x591   : > { %s3254_s24 = smov %s2507_s27  ;;  %28 = sbr.rel (!%p26_p12) target bundleno = 11 (0xb), region = 141 }
 0x598   :  { %1879 = vsyncpa [#allocation3], 1 }
 0x599   :  { %1881 = vsyncpa [#allocation3 + $0x1], 1 }
 0x59a   :  { %1882 = vsyncpa [#allocation6], 1 }
 0x59b   :  { %1884 = vsyncpa [#allocation6 + $0x1], 1 }
 0x59c   :  { %1885 = vsyncpa [#allocation4], 1 }
 0x59d   :  { %1887 = vsyncpa [#allocation4 + $0x1], 1 }
 0x59e   :  { %1888 = vsyncpa [#allocation9], 1 }
 0x59f   :  { %1890 = vsyncpa [#allocation9 + $0x1], 1 }

</bundles_post_ra>
